<compile_context>
chip_gen: v7x
topology: tpu7x:2x2x1
jax: 0.10.0
libtpu: 0.0.40
codegen_flags: <defaults>
</compile_context>

<pallas_src>
import jax
import jax.numpy as jnp
from jax.experimental import pallas as pl
from jax.experimental.pallas import tpu as pltpu


def _lstm_fc_kernel(emb_ref, h0_ref, c0_ref, wih_ref, whh_ref, b_ref,
                    wfc_ref, bfc_ref,
                    logits_ref, hn_ref, cn_ref,
                    hseq_ref):
    """Single-layer LSTM recurrence + output projection, all resident in VMEM.

    emb_ref : (B, T, E)     batch-major embedded inputs
    h0_ref  : (B, H)        initial hidden state
    c0_ref  : (B, H)        initial cell state
    wih_ref : (E, 4H)       input->gates weight, gate order [i, f, o, g]
    whh_ref : (H, 4H)       hidden->gates weight, gate order [i, f, o, g]
    b_ref   : (1, 4H)       combined bias (b_ih + b_hh), gate order [i, f, o, g]
    wfc_ref : (H, Opad)     fc weight (transposed, zero-padded to 128 lanes)
    bfc_ref : (1, Opad)     fc bias  (zero-padded to 128 lanes)
    logits_ref : (B*T, Opad) output logits, rows are PyTorch order (b*T + t)
    hn_ref  : (B, H)        final hidden state
    cn_ref  : (B, H)        final cell state
    hseq_ref: (B, T, H)     VMEM scratch holding all hidden states
    """
    B, T, E = emb_ref.shape
    H = h0_ref.shape[1]

    # ---- Hoisted input projection: one batched MXU matmul for ALL timesteps ----
    # (B,T,E) -> (B*T,E) is a free reshape for batch-major layout (T is the sublane dim).
    x2d = emb_ref[...].reshape(B * T, E)
    pre = jnp.dot(x2d, wih_ref[...],
                  preferred_element_type=jnp.float32) + b_ref[...]     # (B*T, 4H)
    pre = pre.reshape(B, T, 4 * H)                                     # free reshape back

    whh = whh_ref[...]                                                 # hoist weight read

    h = h0_ref[...]
    c = c0_ref[...]

    # ---- Fully unrolled recurrence (T is static) -> static slices everywhere ----
    for t in range(T):
        gates = pre[:, t, :] + jnp.dot(h, whh,
                                       preferred_element_type=jnp.float32)  # (B, 4H)
        # Gate order is [i, f, o, g]: one sigmoid over 3H lanes, one tanh over H lanes.
        sig = jax.nn.sigmoid(gates[:, :3 * H])
        g_g = jnp.tanh(gates[:, 3 * H:])
        i_g = sig[:, 0 * H:1 * H]
        f_g = sig[:, 1 * H:2 * H]
        o_g = sig[:, 2 * H:3 * H]
        c = f_g * c + i_g * g_g
        h = o_g * jnp.tanh(c)
        hseq_ref[:, t, :] = h                                          # static store

    hn_ref[...] = h
    cn_ref[...] = c

    # ---- One big MXU matmul for the final projection over all timesteps ----
    # (B,T,H) -> (B*T,H) is a free reshape (batch-major); rows already match
    # PyTorch's output.reshape(-1, H) ordering.
    hs = hseq_ref[...].reshape(B * T, H)
    logits_ref[...] = (jnp.dot(hs, wfc_ref[...],
                               preferred_element_type=jnp.float32)
                       + bfc_ref[...])


def lstm_fc_pallas(emb_bte, h0, c0, w_ih_t, w_hh_t, bias, w_fc_t_pad, b_fc_pad):
    B, T, E = emb_bte.shape
    H = h0.shape[1]
    Opad = w_fc_t_pad.shape[1]

    vmem = pl.BlockSpec(memory_space=pltpu.MemorySpace.VMEM)
    return pl.pallas_call(
        _lstm_fc_kernel,
        out_shape=(
            jax.ShapeDtypeStruct((B * T, Opad), jnp.float32),   # logits (PyTorch row order)
            jax.ShapeDtypeStruct((B, H), jnp.float32),          # h_n
            jax.ShapeDtypeStruct((B, H), jnp.float32),          # c_n
        ),
        in_specs=[vmem] * 8,
        out_specs=(vmem, vmem, vmem),
        scratch_shapes=[pltpu.VMEM((B, T, H), jnp.float32)],
    )(emb_bte, h0, c0, w_ih_t, w_hh_t, bias, w_fc_t_pad, b_fc_pad)


class TextGeneratorPallas:
    """JAX/Pallas port of TextGenerator (n_layers=1, bidirectional=False)."""

    LANE = 128  # TPU lane width for lane-dense output padding

    def __init__(self, vocab_size, embedding_dim, hidden_dim, output_dim, pad_idx, key):
        self.vocab_size = vocab_size
        self.embedding_dim = embedding_dim
        self.hidden_dim = hidden_dim
        self.output_dim = output_dim
        self.pad_idx = pad_idx

        keys = jax.random.split(key, 8)
        H, E, O, V = hidden_dim, embedding_dim, output_dim, vocab_size
        k = 1.0 / jnp.sqrt(jnp.float32(H))

        emb = jax.random.normal(keys[0], (V, E), jnp.float32)
        self.emb_table = emb.at[pad_idx].set(0.0)                  # padding_idx row zeroed

        # PyTorch LSTM params: weight_ih (4H, E), weight_hh (4H, H), biases (4H,)
        # stored in PyTorch gate order [i, f, g, o].
        self.w_ih = jax.random.uniform(keys[1], (4 * H, E), jnp.float32, -k, k)
        self.w_hh = jax.random.uniform(keys[2], (4 * H, H), jnp.float32, -k, k)
        self.b_ih = jax.random.uniform(keys[3], (4 * H,), jnp.float32, -k, k)
        self.b_hh = jax.random.uniform(keys[4], (4 * H,), jnp.float32, -k, k)

        # fc: (O, H) weight, (O,) bias
        kf = 1.0 / jnp.sqrt(jnp.float32(H))
        self.w_fc = jax.random.uniform(keys[5], (O, H), jnp.float32, -kf, kf)
        self.b_fc = jax.random.uniform(keys[6], (O,), jnp.float32, -kf, kf)

        # ---- Precompute kernel-layout parameters (done once) ----
        # Reorder gate blocks [i, f, g, o] -> [i, f, o, g] and transpose to (in, 4H).
        def reorder(w):
            return jnp.concatenate([w[:2 * H], w[3 * H:4 * H], w[2 * H:3 * H]], axis=0)

        self._w_ih_t = jnp.transpose(reorder(self.w_ih))                   # (E, 4H)
        self._w_hh_t = jnp.transpose(reorder(self.w_hh))                   # (H, 4H)
        self._bias = reorder(self.b_ih + self.b_hh).reshape(1, -1)         # (1, 4H)

        # Lane-dense FC: pad output dim to 128 lanes.
        opad = max(self.LANE, ((O + self.LANE - 1) // self.LANE) * self.LANE)
        self._opad = opad
        wfc_t = jnp.transpose(self.w_fc)                                   # (H, O)
        self._w_fc_t_pad = jnp.zeros((H, opad), jnp.float32).at[:, :O].set(wfc_t)
        self._b_fc_pad = jnp.zeros((1, opad), jnp.float32).at[:, :O].set(self.b_fc)

    def init_hidden(self, batch_size):
        return (jnp.zeros((1, batch_size, self.hidden_dim), jnp.float32),
                jnp.zeros((1, batch_size, self.hidden_dim), jnp.float32))

    def forward(self, text, hidden):
        # text: (B, T) int32 token ids
        B, T = text.shape
        O = self.output_dim

        # Embedding lookup + eval-mode dropout (identity). Stays batch-major (B, T, E).
        embedded = jnp.take(self.emb_table, text, axis=0)          # (B, T, E)

        h0 = hidden[0][0]                                          # (B, H)
        c0 = hidden[1][0]                                          # (B, H)

        logits_pad, h_n, c_n = lstm_fc_pallas(
            embedded, h0, c0,
            self._w_ih_t, self._w_hh_t, self._bias,
            self._w_fc_t_pad, self._b_fc_pad,
        )

        # Rows already in PyTorch order (b*T + t); just drop the lane padding.
        logits = logits_pad[:, :O]
        return logits, (h_n[None], c_n[None])


def _reference_forward(model, text, hidden):
    """Pure-JAX reference of the PyTorch forward (eval mode), using original weights."""
    B, T = text.shape
    H = model.hidden_dim
    emb = jnp.take(model.emb_table, text, axis=0)                  # (B, T, E)
    h, c = hidden[0][0], hidden[1][0]
    outs = []
    for t in range(T):
        gates = emb[:, t, :] @ model.w_ih.T + h @ model.w_hh.T + model.b_ih + model.b_hh
        i_g = jax.nn.sigmoid(gates[:, 0 * H:1 * H])
        f_g = jax.nn.sigmoid(gates[:, 1 * H:2 * H])
        g_g = jnp.tanh(gates[:, 2 * H:3 * H])
        o_g = jax.nn.sigmoid(gates[:, 3 * H:4 * H])
        c = f_g * c + i_g * g_g
        h = o_g * jnp.tanh(c)
        outs.append(h)
    out = jnp.stack(outs, axis=1).reshape(B * T, H)                # (B*T, H)
    return out @ model.w_fc.T + model.b_fc, (h[None], c[None])


if __name__ == "__main__":
    key = jax.random.PRNGKey(0)
    k_param, k_text = jax.random.split(key)

    VOCAB, EMB, HID, OUT, PAD = 64, 32, 32, 64, 0
    B, T = 2, 8

    model = TextGeneratorPallas(VOCAB, EMB, HID, OUT, PAD, k_param)
    text = jax.random.randint(k_text, (B, T), 0, VOCAB, dtype=jnp.int32)
    hidden = model.init_hidden(B)

    logits, (h_n, c_n) = model.forward(text, hidden)
    jax.block_until_ready((logits, h_n, c_n))

    ref_logits, (ref_h, ref_c) = _reference_forward(model, text, hidden)
    assert logits.shape == (B * T, OUT)
    assert h_n.shape == (1, B, HID) and c_n.shape == (1, B, HID)
    assert jnp.allclose(logits, ref_logits, atol=1e-4, rtol=1e-4)
    assert jnp.allclose(h_n, ref_h, atol=1e-5)
    assert jnp.allclose(c_n, ref_c, atol=1e-5)

    print("KERNEL_OK")
</pallas_src>

<mosaic_0001>
module attributes {stable_mosaic.version = 11 : i64} {
  func.func @_lstm_fc_kernel(%arg0: memref<2x8x32xf32, #tpu.memory_space<vmem>>, %arg1: memref<2x32xf32, #tpu.memory_space<vmem>>, %arg2: memref<2x32xf32, #tpu.memory_space<vmem>>, %arg3: memref<32x128xf32, #tpu.memory_space<vmem>>, %arg4: memref<32x128xf32, #tpu.memory_space<vmem>>, %arg5: memref<1x128xf32, #tpu.memory_space<vmem>>, %arg6: memref<32x128xf32, #tpu.memory_space<vmem>>, %arg7: memref<1x128xf32, #tpu.memory_space<vmem>>, %arg8: memref<16x128xf32, #tpu.memory_space<vmem>>, %arg9: memref<2x32xf32, #tpu.memory_space<vmem>>, %arg10: memref<2x32xf32, #tpu.memory_space<vmem>>, %arg11: memref<2x8x32xf32, #tpu.memory_space<vmem>>) attributes {dimension_semantics = [], scalar_prefetch = 0 : i64, scratch_operands = 1 : i64, tpu.core_type = #tpu.core_type<tc>} {
    %c0 = arith.constant 0 : index
    %c0_0 = arith.constant 0 : index
    %c0_1 = arith.constant 0 : index
    %0 = vector.load %arg0[%c0, %c0_0, %c0_1] : memref<2x8x32xf32, #tpu.memory_space<vmem>>, vector<2x8x32xf32>
    %1 = vector.shape_cast %0 : vector<2x8x32xf32> to vector<16x32xf32>
    %c0_2 = arith.constant 0 : index
    %c0_3 = arith.constant 0 : index
    %2 = vector.load %arg3[%c0_2, %c0_3] : memref<32x128xf32, #tpu.memory_space<vmem>>, vector<32x128xf32>
    %cst = arith.constant dense<0.000000e+00> : vector<16x128xf32>
    %3 = tpu.matmul %1, %2, %cst {dimension_numbers = #tpu.dot_dimension_numbers<[1], [0], [0], [1], [0, 0, 1, 1], [], []>} : vector<16x32xf32>, vector<32x128xf32>, vector<16x128xf32> -> vector<16x128xf32>
    %c0_4 = arith.constant 0 : index
    %c0_5 = arith.constant 0 : index
    %4 = vector.load %arg5[%c0_4, %c0_5] : memref<1x128xf32, #tpu.memory_space<vmem>>, vector<1x128xf32>
    %5 = vector.broadcast %4 : vector<1x128xf32> to vector<16x128xf32>
    %6 = arith.addf %3, %5 : vector<16x128xf32>
    %7 = vector.shape_cast %6 : vector<16x128xf32> to vector<2x8x128xf32>
    %c0_6 = arith.constant 0 : index
    %c0_7 = arith.constant 0 : index
    %8 = vector.load %arg4[%c0_6, %c0_7] : memref<32x128xf32, #tpu.memory_space<vmem>>, vector<32x128xf32>
    %c0_8 = arith.constant 0 : index
    %c0_9 = arith.constant 0 : index
    %9 = vector.load %arg1[%c0_8, %c0_9] : memref<2x32xf32, #tpu.memory_space<vmem>>, vector<2x32xf32>
    %c0_10 = arith.constant 0 : index
    %c0_11 = arith.constant 0 : index
    %10 = vector.load %arg2[%c0_10, %c0_11] : memref<2x32xf32, #tpu.memory_space<vmem>>, vector<2x32xf32>
    %11 = vector.extract_strided_slice %7 {offsets = [0, 0, 0], sizes = [2, 1, 128], strides = [1, 1, 1]} : vector<2x8x128xf32> to vector<2x1x128xf32>
    %12 = vector.shape_cast %11 : vector<2x1x128xf32> to vector<2x128xf32>
    %cst_12 = arith.constant dense<0.000000e+00> : vector<2x128xf32>
    %13 = tpu.matmul %9, %8, %cst_12 {dimension_numbers = #tpu.dot_dimension_numbers<[1], [0], [0], [1], [0, 0, 1, 1], [], []>} : vector<2x32xf32>, vector<32x128xf32>, vector<2x128xf32> -> vector<2x128xf32>
    %14 = arith.addf %12, %13 : vector<2x128xf32>
    %15 = vector.extract_strided_slice %14 {offsets = [0, 0], sizes = [2, 96], strides = [1, 1]} : vector<2x128xf32> to vector<2x96xf32>
    %16 = arith.negf %15 : vector<2x96xf32>
    %17 = math.exp %16 : vector<2x96xf32>
    %cst_13 = arith.constant 1.000000e+00 : f32
    %18 = vector.broadcast %cst_13 : f32 to vector<2x96xf32>
    %19 = arith.addf %18, %17 : vector<2x96xf32>
    %20 = arith.divf %18, %19 : vector<2x96xf32>
    %21 = vector.extract_strided_slice %14 {offsets = [0, 96], sizes = [2, 32], strides = [1, 1]} : vector<2x128xf32> to vector<2x32xf32>
    %22 = math.tanh %21 : vector<2x32xf32>
    %23 = vector.extract_strided_slice %20 {offsets = [0, 0], sizes = [2, 32], strides = [1, 1]} : vector<2x96xf32> to vector<2x32xf32>
    %24 = vector.extract_strided_slice %20 {offsets = [0, 32], sizes = [2, 32], strides = [1, 1]} : vector<2x96xf32> to vector<2x32xf32>
    %25 = vector.extract_strided_slice %20 {offsets = [0, 64], sizes = [2, 32], strides = [1, 1]} : vector<2x96xf32> to vector<2x32xf32>
    %26 = arith.mulf %24, %10 : vector<2x32xf32>
    %27 = arith.mulf %23, %22 : vector<2x32xf32>
    %28 = arith.addf %26, %27 : vector<2x32xf32>
    %29 = math.tanh %28 : vector<2x32xf32>
    %30 = arith.mulf %25, %29 : vector<2x32xf32>
    %c0_14 = arith.constant 0 : index
    %c0_15 = arith.constant 0 : index
    %c0_16 = arith.constant 0 : index
    %31 = vector.load %arg11[%c0_14, %c0_15, %c0_16] : memref<2x8x32xf32, #tpu.memory_space<vmem>>, vector<2x1x32xf32>
    %32 = vector.shape_cast %31 : vector<2x1x32xf32> to vector<2x32xf32>
    %33 = vector.shape_cast %30 : vector<2x32xf32> to vector<2x1x32xf32>
    tpu.vector_store %arg11[%c0_14, %c0_15, %c0_16], %33 {strides = array<i32>} : memref<2x8x32xf32, #tpu.memory_space<vmem>>, vector<2x1x32xf32>,
    %34 = vector.extract_strided_slice %7 {offsets = [0, 1, 0], sizes = [2, 1, 128], strides = [1, 1, 1]} : vector<2x8x128xf32> to vector<2x1x128xf32>
    %35 = vector.shape_cast %34 : vector<2x1x128xf32> to vector<2x128xf32>
    %cst_17 = arith.constant dense<0.000000e+00> : vector<2x128xf32>
    %36 = tpu.matmul %30, %8, %cst_17 {dimension_numbers = #tpu.dot_dimension_numbers<[1], [0], [0], [1], [0, 0, 1, 1], [], []>} : vector<2x32xf32>, vector<32x128xf32>, vector<2x128xf32> -> vector<2x128xf32>
    %37 = arith.addf %35, %36 : vector<2x128xf32>
    %38 = vector.extract_strided_slice %37 {offsets = [0, 0], sizes = [2, 96], strides = [1, 1]} : vector<2x128xf32> to vector<2x96xf32>
    %39 = arith.negf %38 : vector<2x96xf32>
    %40 = math.exp %39 : vector<2x96xf32>
    %cst_18 = arith.constant 1.000000e+00 : f32
    %41 = vector.broadcast %cst_18 : f32 to vector<2x96xf32>
    %42 = arith.addf %41, %40 : vector<2x96xf32>
    %43 = arith.divf %41, %42 : vector<2x96xf32>
    %44 = vector.extract_strided_slice %37 {offsets = [0, 96], sizes = [2, 32], strides = [1, 1]} : vector<2x128xf32> to vector<2x32xf32>
    %45 = math.tanh %44 : vector<2x32xf32>
    %46 = vector.extract_strided_slice %43 {offsets = [0, 0], sizes = [2, 32], strides = [1, 1]} : vector<2x96xf32> to vector<2x32xf32>
    %47 = vector.extract_strided_slice %43 {offsets = [0, 32], sizes = [2, 32], strides = [1, 1]} : vector<2x96xf32> to vector<2x32xf32>
    %48 = vector.extract_strided_slice %43 {offsets = [0, 64], sizes = [2, 32], strides = [1, 1]} : vector<2x96xf32> to vector<2x32xf32>
    %49 = arith.mulf %47, %28 : vector<2x32xf32>
    %50 = arith.mulf %46, %45 : vector<2x32xf32>
    %51 = arith.addf %49, %50 : vector<2x32xf32>
    %52 = math.tanh %51 : vector<2x32xf32>
    %53 = arith.mulf %48, %52 : vector<2x32xf32>
    %c0_19 = arith.constant 0 : index
    %c1 = arith.constant 1 : index
    %c0_20 = arith.constant 0 : index
    %54 = vector.load %arg11[%c0_19, %c1, %c0_20] : memref<2x8x32xf32, #tpu.memory_space<vmem>>, vector<2x1x32xf32>
    %55 = vector.shape_cast %54 : vector<2x1x32xf32> to vector<2x32xf32>
    %56 = vector.shape_cast %53 : vector<2x32xf32> to vector<2x1x32xf32>
    tpu.vector_store %arg11[%c0_19, %c1, %c0_20], %56 {strides = array<i32>} : memref<2x8x32xf32, #tpu.memory_space<vmem>>, vector<2x1x32xf32>,
    %57 = vector.extract_strided_slice %7 {offsets = [0, 2, 0], sizes = [2, 1, 128], strides = [1, 1, 1]} : vector<2x8x128xf32> to vector<2x1x128xf32>
    %58 = vector.shape_cast %57 : vector<2x1x128xf32> to vector<2x128xf32>
    %cst_21 = arith.constant dense<0.000000e+00> : vector<2x128xf32>
    %59 = tpu.matmul %53, %8, %cst_21 {dimension_numbers = #tpu.dot_dimension_numbers<[1], [0], [0], [1], [0, 0, 1, 1], [], []>} : vector<2x32xf32>, vector<32x128xf32>, vector<2x128xf32> -> vector<2x128xf32>
    %60 = arith.addf %58, %59 : vector<2x128xf32>
    %61 = vector.extract_strided_slice %60 {offsets = [0, 0], sizes = [2, 96], strides = [1, 1]} : vector<2x128xf32> to vector<2x96xf32>
    %62 = arith.negf %61 : vector<2x96xf32>
    %63 = math.exp %62 : vector<2x96xf32>
    %cst_22 = arith.constant 1.000000e+00 : f32
    %64 = vector.broadcast %cst_22 : f32 to vector<2x96xf32>
    %65 = arith.addf %64, %63 : vector<2x96xf32>
    %66 = arith.divf %64, %65 : vector<2x96xf32>
    %67 = vector.extract_strided_slice %60 {offsets = [0, 96], sizes = [2, 32], strides = [1, 1]} : vector<2x128xf32> to vector<2x32xf32>
    %68 = math.tanh %67 : vector<2x32xf32>
    %69 = vector.extract_strided_slice %66 {offsets = [0, 0], sizes = [2, 32], strides = [1, 1]} : vector<2x96xf32> to vector<2x32xf32>
    %70 = vector.extract_strided_slice %66 {offsets = [0, 32], sizes = [2, 32], strides = [1, 1]} : vector<2x96xf32> to vector<2x32xf32>
    %71 = vector.extract_strided_slice %66 {offsets = [0, 64], sizes = [2, 32], strides = [1, 1]} : vector<2x96xf32> to vector<2x32xf32>
    %72 = arith.mulf %70, %51 : vector<2x32xf32>
    %73 = arith.mulf %69, %68 : vector<2x32xf32>
    %74 = arith.addf %72, %73 : vector<2x32xf32>
    %75 = math.tanh %74 : vector<2x32xf32>
    %76 = arith.mulf %71, %75 : vector<2x32xf32>
    %c0_23 = arith.constant 0 : index
    %c2 = arith.constant 2 : index
    %c0_24 = arith.constant 0 : index
    %77 = vector.load %arg11[%c0_23, %c2, %c0_24] : memref<2x8x32xf32, #tpu.memory_space<vmem>>, vector<2x1x32xf32>
    %78 = vector.shape_cast %77 : vector<2x1x32xf32> to vector<2x32xf32>
    %79 = vector.shape_cast %76 : vector<2x32xf32> to vector<2x1x32xf32>
    tpu.vector_store %arg11[%c0_23, %c2, %c0_24], %79 {strides = array<i32>} : memref<2x8x32xf32, #tpu.memory_space<vmem>>, vector<2x1x32xf32>,
    %80 = vector.extract_strided_slice %7 {offsets = [0, 3, 0], sizes = [2, 1, 128], strides = [1, 1, 1]} : vector<2x8x128xf32> to vector<2x1x128xf32>
    %81 = vector.shape_cast %80 : vector<2x1x128xf32> to vector<2x128xf32>
    %cst_25 = arith.constant dense<0.000000e+00> : vector<2x128xf32>
    %82 = tpu.matmul %76, %8, %cst_25 {dimension_numbers = #tpu.dot_dimension_numbers<[1], [0], [0], [1], [0, 0, 1, 1], [], []>} : vector<2x32xf32>, vector<32x128xf32>, vector<2x128xf32> -> vector<2x128xf32>
    %83 = arith.addf %81, %82 : vector<2x128xf32>
    %84 = vector.extract_strided_slice %83 {offsets = [0, 0], sizes = [2, 96], strides = [1, 1]} : vector<2x128xf32> to vector<2x96xf32>
    %85 = arith.negf %84 : vector<2x96xf32>
    %86 = math.exp %85 : vector<2x96xf32>
    %cst_26 = arith.constant 1.000000e+00 : f32
    %87 = vector.broadcast %cst_26 : f32 to vector<2x96xf32>
    %88 = arith.addf %87, %86 : vector<2x96xf32>
    %89 = arith.divf %87, %88 : vector<2x96xf32>
    %90 = vector.extract_strided_slice %83 {offsets = [0, 96], sizes = [2, 32], strides = [1, 1]} : vector<2x128xf32> to vector<2x32xf32>
    %91 = math.tanh %90 : vector<2x32xf32>
    %92 = vector.extract_strided_slice %89 {offsets = [0, 0], sizes = [2, 32], strides = [1, 1]} : vector<2x96xf32> to vector<2x32xf32>
    %93 = vector.extract_strided_slice %89 {offsets = [0, 32], sizes = [2, 32], strides = [1, 1]} : vector<2x96xf32> to vector<2x32xf32>
    %94 = vector.extract_strided_slice %89 {offsets = [0, 64], sizes = [2, 32], strides = [1, 1]} : vector<2x96xf32> to vector<2x32xf32>
    %95 = arith.mulf %93, %74 : vector<2x32xf32>
    %96 = arith.mulf %92, %91 : vector<2x32xf32>
    %97 = arith.addf %95, %96 : vector<2x32xf32>
    %98 = math.tanh %97 : vector<2x32xf32>
    %99 = arith.mulf %94, %98 : vector<2x32xf32>
    %c0_27 = arith.constant 0 : index
    %c3 = arith.constant 3 : index
    %c0_28 = arith.constant 0 : index
    %100 = vector.load %arg11[%c0_27, %c3, %c0_28] : memref<2x8x32xf32, #tpu.memory_space<vmem>>, vector<2x1x32xf32>
    %101 = vector.shape_cast %100 : vector<2x1x32xf32> to vector<2x32xf32>
    %102 = vector.shape_cast %99 : vector<2x32xf32> to vector<2x1x32xf32>
    tpu.vector_store %arg11[%c0_27, %c3, %c0_28], %102 {strides = array<i32>} : memref<2x8x32xf32, #tpu.memory_space<vmem>>, vector<2x1x32xf32>,
    %103 = vector.extract_strided_slice %7 {offsets = [0, 4, 0], sizes = [2, 1, 128], strides = [1, 1, 1]} : vector<2x8x128xf32> to vector<2x1x128xf32>
    %104 = vector.shape_cast %103 : vector<2x1x128xf32> to vector<2x128xf32>
    %cst_29 = arith.constant dense<0.000000e+00> : vector<2x128xf32>
    %105 = tpu.matmul %99, %8, %cst_29 {dimension_numbers = #tpu.dot_dimension_numbers<[1], [0], [0], [1], [0, 0, 1, 1], [], []>} : vector<2x32xf32>, vector<32x128xf32>, vector<2x128xf32> -> vector<2x128xf32>
    %106 = arith.addf %104, %105 : vector<2x128xf32>
    %107 = vector.extract_strided_slice %106 {offsets = [0, 0], sizes = [2, 96], strides = [1, 1]} : vector<2x128xf32> to vector<2x96xf32>
    %108 = arith.negf %107 : vector<2x96xf32>
    %109 = math.exp %108 : vector<2x96xf32>
    %cst_30 = arith.constant 1.000000e+00 : f32
    %110 = vector.broadcast %cst_30 : f32 to vector<2x96xf32>
    %111 = arith.addf %110, %109 : vector<2x96xf32>
    %112 = arith.divf %110, %111 : vector<2x96xf32>
    %113 = vector.extract_strided_slice %106 {offsets = [0, 96], sizes = [2, 32], strides = [1, 1]} : vector<2x128xf32> to vector<2x32xf32>
    %114 = math.tanh %113 : vector<2x32xf32>
    %115 = vector.extract_strided_slice %112 {offsets = [0, 0], sizes = [2, 32], strides = [1, 1]} : vector<2x96xf32> to vector<2x32xf32>
    %116 = vector.extract_strided_slice %112 {offsets = [0, 32], sizes = [2, 32], strides = [1, 1]} : vector<2x96xf32> to vector<2x32xf32>
    %117 = vector.extract_strided_slice %112 {offsets = [0, 64], sizes = [2, 32], strides = [1, 1]} : vector<2x96xf32> to vector<2x32xf32>
    %118 = arith.mulf %116, %97 : vector<2x32xf32>
    %119 = arith.mulf %115, %114 : vector<2x32xf32>
    %120 = arith.addf %118, %119 : vector<2x32xf32>
    %121 = math.tanh %120 : vector<2x32xf32>
    %122 = arith.mulf %117, %121 : vector<2x32xf32>
    %c0_31 = arith.constant 0 : index
    %c4 = arith.constant 4 : index
    %c0_32 = arith.constant 0 : index
    %123 = vector.load %arg11[%c0_31, %c4, %c0_32] : memref<2x8x32xf32, #tpu.memory_space<vmem>>, vector<2x1x32xf32>
    %124 = vector.shape_cast %123 : vector<2x1x32xf32> to vector<2x32xf32>
    %125 = vector.shape_cast %122 : vector<2x32xf32> to vector<2x1x32xf32>
    tpu.vector_store %arg11[%c0_31, %c4, %c0_32], %125 {strides = array<i32>} : memref<2x8x32xf32, #tpu.memory_space<vmem>>, vector<2x1x32xf32>,
    %126 = vector.extract_strided_slice %7 {offsets = [0, 5, 0], sizes = [2, 1, 128], strides = [1, 1, 1]} : vector<2x8x128xf32> to vector<2x1x128xf32>
    %127 = vector.shape_cast %126 : vector<2x1x128xf32> to vector<2x128xf32>
    %cst_33 = arith.constant dense<0.000000e+00> : vector<2x128xf32>
    %128 = tpu.matmul %122, %8, %cst_33 {dimension_numbers = #tpu.dot_dimension_numbers<[1], [0], [0], [1], [0, 0, 1, 1], [], []>} : vector<2x32xf32>, vector<32x128xf32>, vector<2x128xf32> -> vector<2x128xf32>
    %129 = arith.addf %127, %128 : vector<2x128xf32>
    %130 = vector.extract_strided_slice %129 {offsets = [0, 0], sizes = [2, 96], strides = [1, 1]} : vector<2x128xf32> to vector<2x96xf32>
    %131 = arith.negf %130 : vector<2x96xf32>
    %132 = math.exp %131 : vector<2x96xf32>
    %cst_34 = arith.constant 1.000000e+00 : f32
    %133 = vector.broadcast %cst_34 : f32 to vector<2x96xf32>
    %134 = arith.addf %133, %132 : vector<2x96xf32>
    %135 = arith.divf %133, %134 : vector<2x96xf32>
    %136 = vector.extract_strided_slice %129 {offsets = [0, 96], sizes = [2, 32], strides = [1, 1]} : vector<2x128xf32> to vector<2x32xf32>
    %137 = math.tanh %136 : vector<2x32xf32>
    %138 = vector.extract_strided_slice %135 {offsets = [0, 0], sizes = [2, 32], strides = [1, 1]} : vector<2x96xf32> to vector<2x32xf32>
    %139 = vector.extract_strided_slice %135 {offsets = [0, 32], sizes = [2, 32], strides = [1, 1]} : vector<2x96xf32> to vector<2x32xf32>
    %140 = vector.extract_strided_slice %135 {offsets = [0, 64], sizes = [2, 32], strides = [1, 1]} : vector<2x96xf32> to vector<2x32xf32>
    %141 = arith.mulf %139, %120 : vector<2x32xf32>
    %142 = arith.mulf %138, %137 : vector<2x32xf32>
    %143 = arith.addf %141, %142 : vector<2x32xf32>
    %144 = math.tanh %143 : vector<2x32xf32>
    %145 = arith.mulf %140, %144 : vector<2x32xf32>
    %c0_35 = arith.constant 0 : index
    %c5 = arith.constant 5 : index
    %c0_36 = arith.constant 0 : index
    %146 = vector.load %arg11[%c0_35, %c5, %c0_36] : memref<2x8x32xf32, #tpu.memory_space<vmem>>, vector<2x1x32xf32>
    %147 = vector.shape_cast %146 : vector<2x1x32xf32> to vector<2x32xf32>
    %148 = vector.shape_cast %145 : vector<2x32xf32> to vector<2x1x32xf32>
    tpu.vector_store %arg11[%c0_35, %c5, %c0_36], %148 {strides = array<i32>} : memref<2x8x32xf32, #tpu.memory_space<vmem>>, vector<2x1x32xf32>,
    %149 = vector.extract_strided_slice %7 {offsets = [0, 6, 0], sizes = [2, 1, 128], strides = [1, 1, 1]} : vector<2x8x128xf32> to vector<2x1x128xf32>
    %150 = vector.shape_cast %149 : vector<2x1x128xf32> to vector<2x128xf32>
    %cst_37 = arith.constant dense<0.000000e+00> : vector<2x128xf32>
    %151 = tpu.matmul %145, %8, %cst_37 {dimension_numbers = #tpu.dot_dimension_numbers<[1], [0], [0], [1], [0, 0, 1, 1], [], []>} : vector<2x32xf32>, vector<32x128xf32>, vector<2x128xf32> -> vector<2x128xf32>
    %152 = arith.addf %150, %151 : vector<2x128xf32>
    %153 = vector.extract_strided_slice %152 {offsets = [0, 0], sizes = [2, 96], strides = [1, 1]} : vector<2x128xf32> to vector<2x96xf32>
    %154 = arith.negf %153 : vector<2x96xf32>
    %155 = math.exp %154 : vector<2x96xf32>
    %cst_38 = arith.constant 1.000000e+00 : f32
    %156 = vector.broadcast %cst_38 : f32 to vector<2x96xf32>
    %157 = arith.addf %156, %155 : vector<2x96xf32>
    %158 = arith.divf %156, %157 : vector<2x96xf32>
    %159 = vector.extract_strided_slice %152 {offsets = [0, 96], sizes = [2, 32], strides = [1, 1]} : vector<2x128xf32> to vector<2x32xf32>
    %160 = math.tanh %159 : vector<2x32xf32>
    %161 = vector.extract_strided_slice %158 {offsets = [0, 0], sizes = [2, 32], strides = [1, 1]} : vector<2x96xf32> to vector<2x32xf32>
    %162 = vector.extract_strided_slice %158 {offsets = [0, 32], sizes = [2, 32], strides = [1, 1]} : vector<2x96xf32> to vector<2x32xf32>
    %163 = vector.extract_strided_slice %158 {offsets = [0, 64], sizes = [2, 32], strides = [1, 1]} : vector<2x96xf32> to vector<2x32xf32>
    %164 = arith.mulf %162, %143 : vector<2x32xf32>
    %165 = arith.mulf %161, %160 : vector<2x32xf32>
    %166 = arith.addf %164, %165 : vector<2x32xf32>
    %167 = math.tanh %166 : vector<2x32xf32>
    %168 = arith.mulf %163, %167 : vector<2x32xf32>
    %c0_39 = arith.constant 0 : index
    %c6 = arith.constant 6 : index
    %c0_40 = arith.constant 0 : index
    %169 = vector.load %arg11[%c0_39, %c6, %c0_40] : memref<2x8x32xf32, #tpu.memory_space<vmem>>, vector<2x1x32xf32>
    %170 = vector.shape_cast %169 : vector<2x1x32xf32> to vector<2x32xf32>
    %171 = vector.shape_cast %168 : vector<2x32xf32> to vector<2x1x32xf32>
    tpu.vector_store %arg11[%c0_39, %c6, %c0_40], %171 {strides = array<i32>} : memref<2x8x32xf32, #tpu.memory_space<vmem>>, vector<2x1x32xf32>,
    %172 = vector.extract_strided_slice %7 {offsets = [0, 7, 0], sizes = [2, 1, 128], strides = [1, 1, 1]} : vector<2x8x128xf32> to vector<2x1x128xf32>
    %173 = vector.shape_cast %172 : vector<2x1x128xf32> to vector<2x128xf32>
    %cst_41 = arith.constant dense<0.000000e+00> : vector<2x128xf32>
    %174 = tpu.matmul %168, %8, %cst_41 {dimension_numbers = #tpu.dot_dimension_numbers<[1], [0], [0], [1], [0, 0, 1, 1], [], []>} : vector<2x32xf32>, vector<32x128xf32>, vector<2x128xf32> -> vector<2x128xf32>
    %175 = arith.addf %173, %174 : vector<2x128xf32>
    %176 = vector.extract_strided_slice %175 {offsets = [0, 0], sizes = [2, 96], strides = [1, 1]} : vector<2x128xf32> to vector<2x96xf32>
    %177 = arith.negf %176 : vector<2x96xf32>
    %178 = math.exp %177 : vector<2x96xf32>
    %cst_42 = arith.constant 1.000000e+00 : f32
    %179 = vector.broadcast %cst_42 : f32 to vector<2x96xf32>
    %180 = arith.addf %179, %178 : vector<2x96xf32>
    %181 = arith.divf %179, %180 : vector<2x96xf32>
    %182 = vector.extract_strided_slice %175 {offsets = [0, 96], sizes = [2, 32], strides = [1, 1]} : vector<2x128xf32> to vector<2x32xf32>
    %183 = math.tanh %182 : vector<2x32xf32>
    %184 = vector.extract_strided_slice %181 {offsets = [0, 0], sizes = [2, 32], strides = [1, 1]} : vector<2x96xf32> to vector<2x32xf32>
    %185 = vector.extract_strided_slice %181 {offsets = [0, 32], sizes = [2, 32], strides = [1, 1]} : vector<2x96xf32> to vector<2x32xf32>
    %186 = vector.extract_strided_slice %181 {offsets = [0, 64], sizes = [2, 32], strides = [1, 1]} : vector<2x96xf32> to vector<2x32xf32>
    %187 = arith.mulf %185, %166 : vector<2x32xf32>
    %188 = arith.mulf %184, %183 : vector<2x32xf32>
    %189 = arith.addf %187, %188 : vector<2x32xf32>
    %190 = math.tanh %189 : vector<2x32xf32>
    %191 = arith.mulf %186, %190 : vector<2x32xf32>
    %c0_43 = arith.constant 0 : index
    %c7 = arith.constant 7 : index
    %c0_44 = arith.constant 0 : index
    %192 = vector.load %arg11[%c0_43, %c7, %c0_44] : memref<2x8x32xf32, #tpu.memory_space<vmem>>, vector<2x1x32xf32>
    %193 = vector.shape_cast %192 : vector<2x1x32xf32> to vector<2x32xf32>
    %194 = vector.shape_cast %191 : vector<2x32xf32> to vector<2x1x32xf32>
    tpu.vector_store %arg11[%c0_43, %c7, %c0_44], %194 {strides = array<i32>} : memref<2x8x32xf32, #tpu.memory_space<vmem>>, vector<2x1x32xf32>,
    %c0_45 = arith.constant 0 : index
    %c0_46 = arith.constant 0 : index
    %195 = vector.load %arg9[%c0_45, %c0_46] : memref<2x32xf32, #tpu.memory_space<vmem>>, vector<2x32xf32>
    tpu.vector_store %arg9[%c0_45, %c0_46], %191 {strides = array<i32>} : memref<2x32xf32, #tpu.memory_space<vmem>>, vector<2x32xf32>,
    %c0_47 = arith.constant 0 : index
    %c0_48 = arith.constant 0 : index
    %196 = vector.load %arg10[%c0_47, %c0_48] : memref<2x32xf32, #tpu.memory_space<vmem>>, vector<2x32xf32>
    tpu.vector_store %arg10[%c0_47, %c0_48], %189 {strides = array<i32>} : memref<2x32xf32, #tpu.memory_space<vmem>>, vector<2x32xf32>,
    %c0_49 = arith.constant 0 : index
    %c0_50 = arith.constant 0 : index
    %c0_51 = arith.constant 0 : index
    %197 = vector.load %arg11[%c0_49, %c0_50, %c0_51] : memref<2x8x32xf32, #tpu.memory_space<vmem>>, vector<2x8x32xf32>
    %198 = vector.shape_cast %197 : vector<2x8x32xf32> to vector<16x32xf32>
    %c0_52 = arith.constant 0 : index
    %c0_53 = arith.constant 0 : index
    %199 = vector.load %arg6[%c0_52, %c0_53] : memref<32x128xf32, #tpu.memory_space<vmem>>, vector<32x128xf32>
    %cst_54 = arith.constant dense<0.000000e+00> : vector<16x128xf32>
    %200 = tpu.matmul %198, %199, %cst_54 {dimension_numbers = #tpu.dot_dimension_numbers<[1], [0], [0], [1], [0, 0, 1, 1], [], []>} : vector<16x32xf32>, vector<32x128xf32>, vector<16x128xf32> -> vector<16x128xf32>
    %c0_55 = arith.constant 0 : index
    %c0_56 = arith.constant 0 : index
    %201 = vector.load %arg7[%c0_55, %c0_56] : memref<1x128xf32, #tpu.memory_space<vmem>>, vector<1x128xf32>
    %202 = vector.broadcast %201 : vector<1x128xf32> to vector<16x128xf32>
    %203 = arith.addf %200, %202 : vector<16x128xf32>
    %c0_57 = arith.constant 0 : index
    %c0_58 = arith.constant 0 : index
    %204 = vector.load %arg8[%c0_57, %c0_58] : memref<16x128xf32, #tpu.memory_space<vmem>>, vector<16x128xf32>
    tpu.vector_store %arg8[%c0_57, %c0_58], %203 {strides = array<i32>} : memref<16x128xf32, #tpu.memory_space<vmem>>, vector<16x128xf32>,
    return
  }
}

</mosaic_0001>

<bundles_post_ra>
// kernel: tpu_custom_call.1
= control target key start
LH: loop header
LB: loop body
LE: loop exit
PB: predicated region body
PF: predicated region fallthrough
CT: control target
= control target key end

     0   :  { %16 = vsyncpa [#allocation4], 0  ;;  %s2527_s0 = inlined_call_operand.hbm [shape: f32[2,8,32], index: 0, kind: input, shape index: {}]   ;;  %s2528_s1 = inlined_call_operand.vmem [shape: f32[2,32], index: 1, kind: input, shape index: {}]   ;;  %s2529_s2 = inlined_call_operand.vmem [shape: f32[2,32], index: 2, kind: input, shape index: {}]   ;;  %s2530_s3 = inlined_call_operand.hbm [shape: f32[32,128], index: 3, kind: input, shape index: {}]   ;;  %s2531_s4 = inlined_call_operand.hbm [shape: f32[32,128], index: 4, kind: input, shape index: {}]   ;;  %s2532_s5 = inlined_call_operand.vmem [shape: f32[1,128], index: 5, kind: input, shape index: {}]   ;;  %s2533_s6 = inlined_call_operand.hbm [shape: f32[32,128], index: 6, kind: input, shape index: {}]   ;;  %s2534_s7 = inlined_call_operand.vmem [shape: f32[1,128], index: 7, kind: input, shape index: {}]   ;;  %s2535_s8 = inlined_call_operand.hbm [shape: f32[16,128], index: 8, kind: output, shape index: {0}]   ;;  %s2536_s9 = inlined_call_operand.hbm [shape: f32[2,32], index: 9, kind: output, shape index: {1}]   ;;  %s2537_s10 = inlined_call_operand.hbm [shape: f32[2,32], index: 10, kind: output, shape index: {2}]  }
   0x1   :  { %17 = vsyncpa [#allocation7], 0 }
   0x2   :  { %18 = vsyncpa [#allocation10], 0 }
   0x3   :  { %19 = vsyncpa [#allocation5], 0 }
   0x4   :  { %20 = vsyncpa [#allocation13], 0  ;;  %s2099_s13 = smov [#allocation6]   ;;  %s2100_s15 = smov [#allocation3]  }
   0x5   :  { %s42_s14 = sshll.u32 %s2099_s13, 4  ;;  %s26_s16 = sshll.u32 %s2100_s15, 4  ;;  %s43_s14 = int_to_ptr.vmem [resolvable:$true] %s42_s14  ;;  %s2169_s16 = int_to_ptr.vmem [resolvable:$true] %s26_s16 }
   0x6   :  { %s1935_s19 = scalar_lea.hbm %s2530_s3, 512 }
   0x7   :  { %p1936_p0 = scmp.ne.s32.totalorder %s2530_s3, %s1935_s19  ;;  %p1939_p1 = scmp.lt.u32.totalorder %s1935_s19, %s2530_s3 }
   0x9   :  { %p1941_p2 = pnand %p1939_p1, %p1936_p0 }
   0xb   :  { %1944 = shalt.err (!%p1941_p2)
}
   0xc   :  { %s1945_s24 = scalar_lea.vmem %s43_s14, 512  ;;  %p1950_p4 = scmp.lt.s32.totalorder %s43_s14, %s43_s14 }
   0xd   :  { %p1946_p3 = scmp.ne.s32.totalorder %s43_s14, %s1945_s24  ;;  %p1951_p5 = scmp.lt.s32.totalorder %s1945_s24, %s1945_s24 }
   0xf   :  { %p1952_p6 = por %p1951_p5, %p1950_p4 }
  0x11   :  { %p1953_p7 = pnand %p1952_p6, %p1946_p3 }
  0x13   :  { %1956 = shalt.err (!%p1953_p7)
}
  0x14   :  { %s2101_s25 = smov 128   ;;  %s2102_s26 = smov 8  }
  0x15   :  { %48 = dma.hbm_to_vmem [thread:$0]  %s2530_s3, 512, %s43_s14, [#allocation7], %s2101_s25, %s2101_s25, %s2102_s26  }
  0x16   :  { %s1957_s11 = scalar_lea.hbm %s2527_s0, 256 }
  0x17   :  { %p1958_p8 = scmp.ne.s32.totalorder %s2527_s0, %s1957_s11  ;;  %p1961_p9 = scmp.lt.u32.totalorder %s1957_s11, %s2527_s0 }
  0x19   :  { %p1963_p10 = pnand %p1961_p9, %p1958_p8 }
  0x1b   :  { %1966 = shalt.err (!%p1963_p10)
}
  0x1c   :  { %s1967_s18 = scalar_lea.vmem %s2169_s16, 256  ;;  %p1972_p12 = scmp.lt.s32.totalorder %s2169_s16, %s2169_s16 }
  0x1d   :  { %p1968_p11 = scmp.ne.s32.totalorder %s2169_s16, %s1967_s18  ;;  %p1973_p13 = scmp.lt.s32.totalorder %s1967_s18, %s1967_s18 }
  0x1f   :  { %p1974_p0 = por %p1973_p13, %p1972_p12 }
  0x21   :  { %p1975_p1 = pnand %p1974_p0, %p1968_p11 }
  0x23   :  { %1978 = shalt.err (!%p1975_p1)
}
  0x24   :  { %32 = dma.hbm_to_vmem [thread:$0]  %s2527_s0, 256, %s2169_s16, [#allocation4], %s2101_s25, %s2101_s25, %s2102_s26  }
  0x25   :  { %s2103_s19 = smov [#allocation8]   ;;  %s2104_s21 = smov [#allocation9]  }
  0x26   :  { %s54_s20 = sshll.u32 %s2103_s19, 4  ;;  %s68_s22 = sshll.u32 %s2104_s21, 4  ;;  %s55_s20 = int_to_ptr.vmem [resolvable:$true] %s54_s20  ;;  %s2206_s22 = int_to_ptr.vmem [resolvable:$true] %s68_s22 }
  0x27   :  { %s1979_s27 = scalar_lea.hbm %s2531_s4, 512 }
  0x28   :  { %p1980_p2 = scmp.ne.s32.totalorder %s2531_s4, %s1979_s27  ;;  %p1983_p3 = scmp.lt.u32.totalorder %s1979_s27, %s2531_s4 }
  0x2a   :  { %p1985_p4 = pnand %p1983_p3, %p1980_p2 }
  0x2c   :  { %1988 = shalt.err (!%p1985_p4)
}
  0x2d   :  { %s1989_s0 = scalar_lea.vmem %s55_s20, 512  ;;  %p1994_p6 = scmp.lt.s32.totalorder %s55_s20, %s55_s20 }
  0x2e   :  { %p1990_p5 = scmp.ne.s32.totalorder %s55_s20, %s1989_s0  ;;  %p1995_p7 = scmp.lt.s32.totalorder %s1989_s0, %s1989_s0 }
  0x30   :  { %p1996_p8 = por %p1995_p7, %p1994_p6 }
  0x32   :  { %p1997_p9 = pnand %p1996_p8, %p1990_p5 }
  0x34   :  { %2000 = shalt.err (!%p1997_p9)
}
  0x35   :  { %60 = dma.hbm_to_vmem [thread:$0]  %s2531_s4, 512, %s55_s20, [#allocation7], %s2101_s25, %s2101_s25, %s2102_s26  }
  0x36   :  { %s2001_s17 = scalar_lea.hbm %s2533_s6, 512 }
  0x37   :  { %p2002_p10 = scmp.ne.s32.totalorder %s2533_s6, %s2001_s17  ;;  %p2005_p11 = scmp.lt.u32.totalorder %s2001_s17, %s2533_s6 }
  0x39   :  { %p2007_p12 = pnand %p2005_p11, %p2002_p10 }
  0x3b   :  { %2010 = shalt.err (!%p2007_p12)
}
  0x3c   :  { %s2011_s21 = scalar_lea.vmem %s2206_s22, 512  ;;  %p2016_p0 = scmp.lt.s32.totalorder %s2206_s22, %s2206_s22 }
  0x3d   :  { %p2012_p13 = scmp.ne.s32.totalorder %s2206_s22, %s2011_s21  ;;  %p2017_p1 = scmp.lt.s32.totalorder %s2011_s21, %s2011_s21 }
  0x3f   :  { %p2018_p2 = por %p2017_p1, %p2016_p0 }
  0x41   :  { %p2019_p3 = pnand %p2018_p2, %p2012_p13 }
  0x43   :  { %2022 = shalt.err (!%p2019_p3)
}
  0x44   :  { %74 = dma.hbm_to_vmem [thread:$0]  %s2533_s6, 512, %s2206_s22, [#allocation10], %s2101_s25, %s2101_s25, %s2102_s26  }
  0x45   :  { %2089 = dma.done.wait [#allocation4], 256  }
  0x46   :  { %2090 = vsyncadd [#allocation4], 4294967040 }
  0x47   :  { %2091 = dma.done.wait [#allocation7], 1024  }
  0x48   :  { %2092 = vsyncadd [#allocation7], 4294966272 }
  0x49   :  { %2093 = dma.done.wait [#allocation10], 512  }
  0x4a   :  { %2094 = vsyncadd [#allocation10], 4294966784  ;;  %v2105_v0 = vmov 0.0|0.0   ;;  %vm2106_vm0 = vmmov 0   ;;  %v2107_v1 = vmov 0.0   ;;  %v91_v2 = vld [vmem:[#allocation6] sm:$0xff] }
  0x4b   :  { %1736 = vmatprep.subr.bf16.mxu1 %v2105_v0  ;;  %1637 = vmatprep.mubr.msk.f32.mxu1 %vm2106_vm0, %v2107_v1  ;;  %v92_v3 = vld [vmem:[#allocation6 + $0x8] sm:$0xff]  ;;  %v184_v4 = vld [vmem:[#allocation8] sm:$0xff]  ;;  %vm102_vm1 = vcmask 261120   ;;  %v93_v7 = vld [vmem:[#allocation6 + $0x10] sm:$0xff]  ;;  %s2108_s23 = smov 32   ;;  %vm337_vm2 = vcmask 1041409  }
  0x4c   :  { %v1728_v5 = vpack.c.bf16 %v92_v3, %v91_v2  ;;  %v185_v6 = vld [vmem:[#allocation8 + $0x8] sm:$0xff]  ;;  %v94_v8 = vld [vmem:[#allocation6 + $0x18] sm:$0xff]  ;;  %v186_v11 = vld [vmem:[#allocation8 + $0x10] sm:$0xff]  ;;  %vm333_vm3 = vcmask 253952   ;;  %vm481_vm4 = vcmask 254977   ;;  %vm629_vm5 = vcmask 256002  }
  0x4d   :  { %v2246_v9 = vpack.c.bf16 %v185_v6, %v184_v4  ;;  %v1732_v10 = vpack.c.bf16 %v94_v8, %v93_v7  ;;  %v187_v12 = vld [vmem:[#allocation8 + $0x18] sm:$0xff]  ;;  %v89_v13 = vld [vmem:[#allocation3] sm:$0xff]  ;;  %v189_v14 = vld [vmem:[%s2529_s2] sm:$0x3]  ;;  %vm778_vm6 = vcmask 257027   ;;  %s2110_s28 = smov 96  }
  0x4e   :  { %1729 = vmatprep.subr.bf16.mxu0 %v1728_v5  ;;  %1626 = vmatprep.mubr.msk.f32.mxu0 %vm102_vm1, %v89_v13  ;;  %v2253_v15 = vpack.c.bf16 %v187_v12, %v186_v11  ;;  %v284_v16 = vrot.slane %v189_v14, 1  ;;  %v188_v17 = vld [vmem:[%s2528_s1] sm:$0x3]  ;;  %v90_v18 = vld [vmem:[#allocation3 + $0x8] sm:$0xff]  ;;  %vm927_vm7 = vcmask 258052   ;;  %vm1076_vm8 = vcmask 259077  }
  0x4f   :  { %1738 = vmatpush3.bf16.msra.mxu1 %v2246_v9  ;;  %1731 = vmatpush3.bf16.msra.mxu0 %v1728_v5  ;;  %v1536_v19 = vld [vmem:[%s2532_s5] ss:$0 sm:$0xff]  ;;  %s2109_s5 = smov 64   ;;  %vm1225_vm9 = vcmask 260102   ;;  %vm1374_vm10 = vcmask 261127   ;;  %s2111_s29 = smov [#allocation12]  }
  0x50   :  { %1739 = vmatprep.subr.bf16.mxu1 %v2105_v0  ;;  %1733 = vmatprep.subr.bf16.mxu0 %v1732_v10  ;;  %s1508_s30 = sshll.u32 %s2111_s29, 4  ;;  %s1509_s30 = int_to_ptr.vmem [resolvable:$true] %s1508_s30 }
  0x51   :  { %287 = vrot.lane.b32.xlu1 %v284_v16, %s2108_s23  ;;  %s2023_s11 = scalar_lea.vmem %s1509_s30, 32  ;;  %p2028_p5 = scmp.lt.s32.totalorder %s1509_s30, %s1509_s30 }
  0x52   :  { %p2024_p4 = scmp.ne.s32.totalorder %s1509_s30, %s2023_s11  ;;  %p2029_p6 = scmp.lt.s32.totalorder %s2023_s11, %s2023_s11 }
  0x53   :  { %1741 = vmatpush3.bf16.msra.mxu1 %v2253_v15  ;;  %1735 = vmatpush3.bf16.msra.mxu0 %v1732_v10 }
  0x54   :  { %1742 = vmatprep.subr.bf16.mxu0 %v2105_v0  ;;  %1748 = vmatprep.subr.bf16.mxu1 %v2105_v0  ;;  %p2030_p7 = por %p2029_p6, %p2028_p5 }
  0x55   :  { %285 = vrot.lane.b32.xlu1 %v189_v14, %s2108_s23 }
  0x56   :  { %1638 = vmatmul.mubr.msk.f32.vlgmr.msra.gmra.mrb[0].mxu1 %vm102_vm1, %v188_v17  ;;  %1627 = vmatmul.mubr.msk.f32.vlgmr.msra.gmra.mrb[0].mxu0 %vm102_vm1, %v90_v18  ;;  %p2031_p8 = pnand %p2030_p7, %p2024_p4 }
  0x57   :  { %1744 = vmatpush3.bf16.msra.mxu0 %v2246_v9  ;;  %1648 = vmatprep.mubr.msk.f32.mxu0 %vm2106_vm0, %v2107_v1 }
  0x58   :  { %1745 = vmatprep.subr.bf16.mxu0 %v2105_v0  ;;  %1750 = vmatpush3.bf16.msra.mxu1 %v2246_v9 }
  0x59   :  { %1751 = vmatprep.subr.bf16.mxu1 %v2105_v0  ;;  %1659 = vmatprep.mubr.msk.f32.mxu1 %vm2106_vm0, %v2107_v1 }
  0x5b   :  { %1747 = vmatpush3.bf16.msra.mxu0 %v2253_v15 }
  0x5c   :  { %1753 = vmatpush3.bf16.msra.mxu1 %v2253_v15  ;;  %1754 = vmatprep.subr.bf16.mxu0 %v2105_v0 }
  0x5d   :  { %1760 = vmatprep.subr.bf16.mxu1 %v2105_v0 }
  0xc3   :  { %v288_v43 = vpop.permute.xlu1 %287 }
  0xc7   :  { %v286_v45 = vpop.permute.xlu1 %285 }
 0x129   :  { %v259_v20 = vpop.f32.mrb[0].mxu1  ;;  %v1628_v21 = vpop.f32.mrb[0].mxu0 }
 0x12a   :  { %v264_v22 = vrot.slane %v259_v20, 1  ;;  %v2281_v23 = vadd.f32 %v1628_v21, %v1536_v19  ;;  %v1639_v24 = vpop.f32.mrb[1].mxu1  ;;  %v175_v25 = vpop.f32.mrb[1].mxu0 }
 0x12b   :  { %v2283_v26 = vadd.f32 %v1536_v19, %v175_v25 }
 0x12c   :  { %v268_v27 = vadd.f32 %v264_v22, %v2281_v23 }
 0x12d   :  { %v267_v28 = vadd.f32 %v259_v20, %v2283_v26 }
 0x12e   :  { %1807 = vtanh.f32 %v268_v27  ;;  %v1541_v31 = vmul.f32 -1.442695, %v268_v27 }
 0x12f   :  { %1809 = vtanh.f32 %v267_v28  ;;  %v1540_v32 = vmul.f32 -1.442695, %v267_v28 }
 0x130   :  { %1811 = vpow2.f32 %v1541_v31 }
 0x131   :  { %1813 = vpow2.f32 %v1540_v32 }
 0x138   :  { %v1808_v29 = vpop.eup %1807 }
 0x139   :  { %297 = vrot.lane.b32.xlu0 %v1808_v29, %s2108_s23  ;;  %v1810_v30 = vpop.eup %1809 }
 0x13a   :  { %v1812_v33 = vpop.eup %1811 }
 0x13b   :  { %v276_v34 = vadd.f32 1.0, %v1812_v33  ;;  %v1814_v35 = vpop.eup %1813 }
 0x13c   :  { %v275_v36 = vadd.f32 1.0, %v1814_v35 }
 0x13d   :  { %295 = vrot.lane.b32.xlu0 %v1810_v30, %s2108_s23  ;;  %1815 = vrcp.f32 %v276_v34 }
 0x13e   :  { %1817 = vrcp.f32 %v275_v36 }
 0x147   :  { %v1816_v37 = vpop.eup %1815 }
 0x148   :  { %v1818_v40 = vpop.eup %1817  ;;  %v292_v44 = vmul.f32 %v1816_v37, %v288_v43 }
 0x149   :  { %v291_v48 = vmul.f32 %v1818_v40, %v286_v45 }
 0x1ab   :  { %v298_v38 = vpop.permute.xlu0 %297 }
 0x1ac   :  { %v302_v39 = vmul.f32 %v1816_v37, %v298_v38 }
 0x1ae   :  { %307 = vrot.lane.b32.xlu0 %v302_v39, %s2108_s23 }
 0x1af   :  { %v296_v41 = vpop.permute.xlu0 %295 }
 0x1b0   :  { %v301_v42 = vmul.f32 %v1818_v40, %v296_v41 }
 0x1b2   :  { %305 = vrot.lane.b32.xlu1 %v301_v42, %s2108_s23 }
 0x220   :  { %v308_v46 = vpop.permute.xlu0 %307 }
 0x221   :  { %v312_v47 = vadd.f32 %v308_v46, %v292_v44 }
 0x223   :  { %1819 = vtanh.f32 %v312_v47  ;;  %v436_v19 = vrot.slane %v312_v47, 7 }
 0x224   :  { %v306_v49 = vpop.permute.xlu1 %305 }
 0x225   :  { %v311_v50 = vadd.f32 %v306_v49, %v291_v48 }
 0x227   :  { %1821 = vtanh.f32 %v311_v50  ;;  %v435_v21 = vrot.slane %v311_v50, 7 }
 0x22d   :  { %v1820_v51 = vpop.eup %1819 }
 0x22e   :  { %319 = vrot.lane.b32.xlu0 %v1820_v51, %s2108_s23 }
 0x231   :  { %v1822_v52 = vpop.eup %1821 }
 0x232   :  { %317 = vrot.lane.b32.xlu1 %v1822_v52, %s2108_s23 }
 0x2a0   :  { %v320_v53 = vpop.permute.xlu0 %319 }
 0x2a1   :  { %v2293_v54 = vmul.f32 %v1816_v37, %v320_v53 }
 0x2a3   :  { %v336_v56 = vrot.slane %v2293_v54, 7 }
 0x2a4   :  { %v318_v55 = vpop.permute.xlu1 %317 }
 0x2a5   :  { %v2296_v57 = vmul.f32 %v1818_v40, %v318_v55 }
 0x2a7   :  { %v338_v58 = vsel %vm337_vm2, %v336_v56, %v2296_v57 }
 0x2a8   :  { %339 = vrot.lane.b32.xlu0 %v338_v58, %s2109_s5 }
 0x31a   :  { %v340_v59 = vpop.permute.xlu0 %339 }
 0x31b   :  { %1649 = vmatmul.mubr.msk.f32.vlgmr.msra.gmra.mrb[2].mxu0 %vm102_vm1, %v340_v59 }
 0x31c   :  { %1756 = vmatpush3.bf16.msra.mxu0 %v2246_v9  ;;  %1670 = vmatprep.mubr.msk.f32.mxu0 %vm2106_vm0, %v2107_v1 }
 0x31d   :  { %1757 = vmatprep.subr.bf16.mxu0 %v2105_v0 }
 0x320   :  { %1759 = vmatpush3.bf16.msra.mxu0 %v2253_v15 }
 0x321   :  { %1766 = vmatprep.subr.bf16.mxu0 %v2105_v0 }
 0x3ee   :  { %v409_v60 = vpop.f32.mrb[2].mxu0 }
 0x3ef   :  { %v414_v61 = vrot.slane %v409_v60, 7  ;;  %v418_v62 = vadd.f32 %v409_v60, %v2281_v23  ;;  %v1650_v63 = vpop.f32.mrb[3].mxu0 }
 0x3f1   :  { %v417_v2 = vadd.f32 %v414_v61, %v2283_v26  ;;  %1823 = vtanh.f32 %v418_v62  ;;  %v1544_v5 = vmul.f32 -1.442695, %v418_v62 }
 0x3f3   :  { %1825 = vtanh.f32 %v417_v2  ;;  %v1543_v6 = vmul.f32 -1.442695, %v417_v2 }
 0x3f4   :  { %1827 = vpow2.f32 %v1544_v5 }
 0x3f5   :  { %1829 = vpow2.f32 %v1543_v6 }
 0x3fb   :  { %v1824_v3 = vpop.eup %1823 }
 0x3fc   :  { %445 = vrot.lane.b32.xlu0 %v1824_v3, %s2108_s23 }
 0x3fd   :  { %v1826_v4 = vpop.eup %1825 }
 0x3fe   :  { %443 = vrot.lane.b32.xlu1 %v1826_v4, %s2108_s23  ;;  %v1828_v7 = vpop.eup %1827 }
 0x3ff   :  { %v1830_v8 = vpop.eup %1829  ;;  %v426_v10 = vadd.f32 1.0, %v1828_v7 }
 0x400   :  { %v425_v11 = vadd.f32 1.0, %v1830_v8 }
 0x401   :  { %1831 = vrcp.f32 %v426_v10 }
 0x402   :  { %1833 = vrcp.f32 %v425_v11 }
 0x40b   :  { %v1832_v12 = vpop.eup %1831 }
 0x40c   :  { %v1834_v16 = vpop.eup %1833  ;;  %v440_v20 = vmul.f32 %v1832_v12, %v436_v19 }
 0x40d   :  { %v439_v25 = vmul.f32 %v1834_v16, %v435_v21 }
 0x46e   :  { %v446_v13 = vpop.permute.xlu0 %445 }
 0x46f   :  { %v450_v14 = vmul.f32 %v1832_v12, %v446_v13 }
 0x470   :  { %v444_v17 = vpop.permute.xlu1 %443 }
 0x471   :  { %455 = vrot.lane.b32.xlu0 %v450_v14, %s2108_s23  ;;  %v449_v18 = vmul.f32 %v1834_v16, %v444_v17 }
 0x473   :  { %453 = vrot.lane.b32.xlu1 %v449_v18, %s2108_s23 }
 0x4e3   :  { %v456_v22 = vpop.permute.xlu0 %455 }
 0x4e4   :  { %v460_v24 = vadd.f32 %v456_v22, %v440_v20 }
 0x4e5   :  { %v454_v27 = vpop.permute.xlu1 %453 }
 0x4e6   :  { %1835 = vtanh.f32 %v460_v24  ;;  %v459_v28 = vadd.f32 %v454_v27, %v439_v25  ;;  %v584_v61 = vrot.slane %v460_v24, 7 }
 0x4e8   :  { %1837 = vtanh.f32 %v459_v28  ;;  %v583_v60 = vrot.slane %v459_v28, 7 }
 0x4f0   :  { %v1836_v29 = vpop.eup %1835 }
 0x4f1   :  { %467 = vrot.lane.b32.xlu0 %v1836_v29, %s2108_s23 }
 0x4f2   :  { %v1838_v30 = vpop.eup %1837 }
 0x4f3   :  { %465 = vrot.lane.b32.xlu1 %v1838_v30, %s2108_s23 }
 0x563   :  { %v468_v31 = vpop.permute.xlu0 %467 }
 0x564   :  { %v2318_v34 = vmul.f32 %v1832_v12, %v468_v31 }
 0x565   :  { %v466_v32 = vpop.permute.xlu1 %465 }
 0x566   :  { %v2316_v33 = vmul.f32 %v1834_v16, %v466_v32 }
 0x568   :  { %v484_v35 = vrot.slane %v2316_v33, 1 }
 0x56a   :  { %v485_v36 = vsel %vm337_vm2, %v2318_v34, %v484_v35 }
 0x56b   :  { %486 = vrot.lane.b32.xlu1 %v485_v36, %s2109_s5 }
 0x5dd   :  { %v487_v37 = vpop.permute.xlu1 %486 }
 0x5de   :  { %1660 = vmatmul.mubr.msk.f32.vlgmr.msra.gmra.mrb[2].mxu1 %vm102_vm1, %v487_v37 }
 0x5df   :  { %1762 = vmatpush3.bf16.msra.mxu1 %v2246_v9  ;;  %1681 = vmatprep.mubr.msk.f32.mxu1 %vm2106_vm0, %v2107_v1 }
 0x5e0   :  { %1763 = vmatprep.subr.bf16.mxu1 %v2105_v0 }
 0x5e3   :  { %1765 = vmatpush3.bf16.msra.mxu1 %v2253_v15 }
 0x5e4   :  { %1772 = vmatprep.subr.bf16.mxu1 %v2105_v0 }
 0x6b1   :  { %v556_v38 = vpop.f32.mrb[2].mxu1 }
 0x6b2   :  { %v561_v39 = vrot.slane %v556_v38, 6  ;;  %v562_v40 = vrot.slane %v556_v38, 7  ;;  %v1661_v41 = vpop.f32.mrb[3].mxu1 }
 0x6b4   :  { %v565_v42 = vadd.f32 %v561_v39, %v2283_v26  ;;  %v566_v43 = vadd.f32 %v562_v40, %v2281_v23 }
 0x6b6   :  { %1839 = vtanh.f32 %v565_v42  ;;  %v1546_v46 = vmul.f32 -1.442695, %v565_v42  ;;  %v1547_v47 = vmul.f32 -1.442695, %v566_v43 }
 0x6b7   :  { %1841 = vtanh.f32 %v566_v43 }
 0x6b8   :  { %1843 = vpow2.f32 %v1546_v46 }
 0x6b9   :  { %1845 = vpow2.f32 %v1547_v47 }
 0x6c0   :  { %v1840_v44 = vpop.eup %1839 }
 0x6c1   :  { %v1842_v45 = vpop.eup %1841  ;;  %591 = vrot.lane.b32.xlu0 %v1840_v44, %s2108_s23 }
 0x6c2   :  { %593 = vrot.lane.b32.xlu1 %v1842_v45, %s2108_s23  ;;  %v1844_v48 = vpop.eup %1843 }
 0x6c3   :  { %v1846_v49 = vpop.eup %1845  ;;  %v573_v50 = vadd.f32 1.0, %v1844_v48 }
 0x6c4   :  { %v574_v51 = vadd.f32 1.0, %v1846_v49 }
 0x6c5   :  { %1847 = vrcp.f32 %v573_v50 }
 0x6c6   :  { %1849 = vrcp.f32 %v574_v51 }
 0x6cf   :  { %v1848_v52 = vpop.eup %1847 }
 0x6d0   :  { %v1850_v55 = vpop.eup %1849  ;;  %v587_v62 = vmul.f32 %v1848_v52, %v583_v60 }
 0x6d1   :  { %v588_v63 = vmul.f32 %v1850_v55, %v584_v61 }
 0x733   :  { %v592_v53 = vpop.permute.xlu0 %591 }
 0x734   :  { %v594_v56 = vpop.permute.xlu1 %593  ;;  %v597_v58 = vmul.f32 %v1848_v52, %v592_v53 }
 0x735   :  { %v598_v59 = vmul.f32 %v1850_v55, %v594_v56 }
 0x736   :  { %601 = vrot.lane.b32.xlu0 %v597_v58, %s2108_s23 }
 0x737   :  { %603 = vrot.lane.b32.xlu1 %v598_v59, %s2108_s23 }
 0x7a8   :  { %v602_v2 = vpop.permute.xlu0 %601 }
 0x7a9   :  { %v604_v3 = vpop.permute.xlu1 %603  ;;  %v607_v4 = vadd.f32 %v602_v2, %v587_v62 }
 0x7aa   :  { %v608_v5 = vadd.f32 %v604_v3, %v588_v63 }
 0x7ab   :  { %1851 = vtanh.f32 %v607_v4  ;;  %v732_v42 = vrot.slane %v607_v4, 7 }
 0x7ac   :  { %1853 = vtanh.f32 %v608_v5  ;;  %v733_v43 = vrot.slane %v608_v5, 7 }
 0x7b5   :  { %v1852_v6 = vpop.eup %1851 }
 0x7b6   :  { %v1854_v7 = vpop.eup %1853  ;;  %613 = vrot.lane.b32.xlu0 %v1852_v6, %s2108_s23 }
 0x7b7   :  { %615 = vrot.lane.b32.xlu1 %v1854_v7, %s2108_s23 }
 0x828   :  { %v614_v8 = vpop.permute.xlu0 %613 }
 0x829   :  { %v616_v10 = vpop.permute.xlu1 %615  ;;  %v2339_v11 = vmul.f32 %v1848_v52, %v614_v8 }
 0x82a   :  { %v2341_v12 = vmul.f32 %v1850_v55, %v616_v10 }
 0x82b   :  { %v632_v13 = vrot.slane %v2339_v11, 2 }
 0x82c   :  { %v633_v14 = vrot.slane %v2341_v12, 1 }
 0x82e   :  { %v634_v16 = vsel %vm337_vm2, %v633_v14, %v632_v13 }
 0x82f   :  { %635 = vrot.lane.b32.xlu0 %v634_v16, %s2109_s5 }
 0x8a1   :  { %v636_v17 = vpop.permute.xlu0 %635 }
 0x8a2   :  { %1671 = vmatmul.mubr.msk.f32.vlgmr.msra.gmra.mrb[4].mxu0 %vm102_vm1, %v636_v17 }
 0x8a3   :  { %1768 = vmatpush3.bf16.msra.mxu0 %v2246_v9  ;;  %1692 = vmatprep.mubr.msk.f32.mxu0 %vm2106_vm0, %v2107_v1 }
 0x8a4   :  { %1769 = vmatprep.subr.bf16.mxu0 %v2105_v0 }
 0x8a7   :  { %1771 = vmatpush3.bf16.msra.mxu0 %v2253_v15 }
 0x8a8   :  { %1778 = vmatprep.subr.bf16.mxu0 %v2105_v0 }
 0x975   :  { %v705_v18 = vpop.f32.mrb[4].mxu0 }
 0x976   :  { %v710_v19 = vrot.slane %v705_v18, 5  ;;  %v711_v20 = vrot.slane %v705_v18, 6  ;;  %v1672_v21 = vpop.f32.mrb[5].mxu0 }
 0x978   :  { %v714_v22 = vadd.f32 %v710_v19, %v2283_v26  ;;  %v715_v24 = vadd.f32 %v711_v20, %v2281_v23 }
 0x97a   :  { %1855 = vtanh.f32 %v714_v22  ;;  %v1549_v28 = vmul.f32 -1.442695, %v714_v22  ;;  %v1550_v29 = vmul.f32 -1.442695, %v715_v24 }
 0x97b   :  { %1857 = vtanh.f32 %v715_v24 }
 0x97c   :  { %1859 = vpow2.f32 %v1549_v28 }
 0x97d   :  { %1861 = vpow2.f32 %v1550_v29 }
 0x984   :  { %v1856_v25 = vpop.eup %1855 }
 0x985   :  { %v1858_v27 = vpop.eup %1857  ;;  %740 = vrot.lane.b32.xlu1 %v1856_v25, %s2108_s23 }
 0x986   :  { %742 = vrot.lane.b32.xlu0 %v1858_v27, %s2108_s23  ;;  %v1860_v30 = vpop.eup %1859 }
 0x987   :  { %v1862_v31 = vpop.eup %1861  ;;  %v722_v32 = vadd.f32 1.0, %v1860_v30 }
 0x988   :  { %v723_v35 = vadd.f32 1.0, %v1862_v31 }
 0x989   :  { %1863 = vrcp.f32 %v722_v32 }
 0x98a   :  { %1865 = vrcp.f32 %v723_v35 }
 0x993   :  { %v1864_v36 = vpop.eup %1863 }
 0x994   :  { %v1866_v38 = vpop.eup %1865  ;;  %v736_v44 = vmul.f32 %v1864_v36, %v732_v42 }
 0x995   :  { %v737_v45 = vmul.f32 %v1866_v38, %v733_v43 }
 0x9f7   :  { %v741_v37 = vpop.permute.xlu1 %740 }
 0x9f8   :  { %v743_v39 = vpop.permute.xlu0 %742  ;;  %v746_v40 = vmul.f32 %v1864_v36, %v741_v37 }
 0x9f9   :  { %v747_v41 = vmul.f32 %v1866_v38, %v743_v39 }
 0x9fa   :  { %750 = vrot.lane.b32.xlu1 %v746_v40, %s2108_s23 }
 0x9fb   :  { %752 = vrot.lane.b32.xlu0 %v747_v41, %s2108_s23 }
 0xa6c   :  { %v751_v46 = vpop.permute.xlu1 %750 }
 0xa6d   :  { %v753_v47 = vpop.permute.xlu0 %752  ;;  %v756_v48 = vadd.f32 %v751_v46, %v736_v44 }
 0xa6e   :  { %v757_v49 = vadd.f32 %v753_v47, %v737_v45 }
 0xa6f   :  { %1867 = vtanh.f32 %v756_v48  ;;  %v881_v25 = vrot.slane %v756_v48, 7 }
 0xa70   :  { %1869 = vtanh.f32 %v757_v49  ;;  %v882_v27 = vrot.slane %v757_v49, 7 }
 0xa79   :  { %v1868_v50 = vpop.eup %1867 }
 0xa7a   :  { %v1870_v51 = vpop.eup %1869  ;;  %762 = vrot.lane.b32.xlu1 %v1868_v50, %s2108_s23 }
 0xa7b   :  { %764 = vrot.lane.b32.xlu0 %v1870_v51, %s2108_s23 }
 0xaec   :  { %v763_v52 = vpop.permute.xlu1 %762 }
 0xaed   :  { %v765_v53 = vpop.permute.xlu0 %764  ;;  %v2362_v55 = vmul.f32 %v1864_v36, %v763_v52 }
 0xaee   :  { %v2364_v56 = vmul.f32 %v1866_v38, %v765_v53 }
 0xaef   :  { %v781_v58 = vrot.slane %v2362_v55, 3 }
 0xaf0   :  { %v782_v59 = vrot.slane %v2364_v56, 2 }
 0xaf2   :  { %v783_v60 = vsel %vm337_vm2, %v782_v59, %v781_v58 }
 0xaf3   :  { %784 = vrot.lane.b32.xlu1 %v783_v60, %s2109_s5 }
 0xb65   :  { %v785_v61 = vpop.permute.xlu1 %784 }
 0xb66   :  { %1682 = vmatmul.mubr.msk.f32.vlgmr.msra.gmra.mrb[4].mxu1 %vm102_vm1, %v785_v61 }
 0xb67   :  { %1774 = vmatpush3.bf16.msra.mxu1 %v2246_v9  ;;  %1703 = vmatprep.mubr.msk.f32.mxu1 %vm2106_vm0, %v2107_v1 }
 0xb68   :  { %1775 = vmatprep.subr.bf16.mxu1 %v2105_v0 }
 0xb6b   :  { %1777 = vmatpush3.bf16.msra.mxu1 %v2253_v15 }
 0xc39   :  { %v854_v62 = vpop.f32.mrb[4].mxu1 }
 0xc3a   :  { %v859_v63 = vrot.slane %v854_v62, 4  ;;  %v860_v2 = vrot.slane %v854_v62, 5  ;;  %v1683_v3 = vpop.f32.mrb[5].mxu1 }
 0xc3c   :  { %v863_v4 = vadd.f32 %v859_v63, %v2283_v26  ;;  %v864_v5 = vadd.f32 %v860_v2, %v2281_v23 }
 0xc3e   :  { %1871 = vtanh.f32 %v863_v4  ;;  %v1552_v8 = vmul.f32 -1.442695, %v863_v4  ;;  %v1553_v10 = vmul.f32 -1.442695, %v864_v5 }
 0xc3f   :  { %1873 = vtanh.f32 %v864_v5 }
 0xc40   :  { %1875 = vpow2.f32 %v1552_v8 }
 0xc41   :  { %1877 = vpow2.f32 %v1553_v10 }
 0xc48   :  { %v1872_v6 = vpop.eup %1871 }
 0xc49   :  { %v1874_v7 = vpop.eup %1873  ;;  %889 = vrot.lane.b32.xlu0 %v1872_v6, %s2108_s23 }
 0xc4a   :  { %891 = vrot.lane.b32.xlu1 %v1874_v7, %s2108_s23  ;;  %v1876_v13 = vpop.eup %1875 }
 0xc4b   :  { %v1878_v14 = vpop.eup %1877  ;;  %v871_v16 = vadd.f32 1.0, %v1876_v13 }
 0xc4c   :  { %v872_v17 = vadd.f32 1.0, %v1878_v14 }
 0xc4d   :  { %1879 = vrcp.f32 %v871_v16 }
 0xc4e   :  { %1881 = vrcp.f32 %v872_v17 }
 0xc57   :  { %v1880_v18 = vpop.eup %1879 }
 0xc58   :  { %v1882_v20 = vpop.eup %1881  ;;  %v885_v28 = vmul.f32 %v1880_v18, %v881_v25 }
 0xc59   :  { %v886_v29 = vmul.f32 %v1882_v20, %v882_v27 }
 0xcbb   :  { %v890_v19 = vpop.permute.xlu0 %889 }
 0xcbc   :  { %v892_v21 = vpop.permute.xlu1 %891  ;;  %v895_v22 = vmul.f32 %v1880_v18, %v890_v19 }
 0xcbd   :  { %v896_v24 = vmul.f32 %v1882_v20, %v892_v21 }
 0xcbe   :  { %899 = vrot.lane.b32.xlu0 %v895_v22, %s2108_s23 }
 0xcbf   :  { %901 = vrot.lane.b32.xlu1 %v896_v24, %s2108_s23 }
 0xd30   :  { %v900_v30 = vpop.permute.xlu0 %899 }
 0xd31   :  { %v902_v31 = vpop.permute.xlu1 %901  ;;  %v905_v32 = vadd.f32 %v900_v30, %v885_v28 }
 0xd32   :  { %v906_v35 = vadd.f32 %v902_v31, %v886_v29 }
 0xd33   :  { %1883 = vtanh.f32 %v905_v32  ;;  %v1030_v4 = vrot.slane %v905_v32, 7 }
 0xd34   :  { %1885 = vtanh.f32 %v906_v35  ;;  %v1031_v5 = vrot.slane %v906_v35, 7 }
 0xd3d   :  { %v1884_v36 = vpop.eup %1883 }
 0xd3e   :  { %v1886_v37 = vpop.eup %1885  ;;  %911 = vrot.lane.b32.xlu0 %v1884_v36, %s2108_s23 }
 0xd3f   :  { %913 = vrot.lane.b32.xlu1 %v1886_v37, %s2108_s23 }
 0xdb0   :  { %v912_v38 = vpop.permute.xlu0 %911 }
 0xdb1   :  { %v914_v39 = vpop.permute.xlu1 %913  ;;  %v2384_v40 = vmul.f32 %v1880_v18, %v912_v38 }
 0xdb2   :  { %v2386_v41 = vmul.f32 %v1882_v20, %v914_v39 }
 0xdb3   :  { %v930_v42 = vrot.slane %v2384_v40, 4 }
 0xdb4   :  { %v931_v43 = vrot.slane %v2386_v41, 3 }
 0xdb6   :  { %v932_v44 = vsel %vm337_vm2, %v931_v43, %v930_v42 }
 0xdb7   :  { %933 = vrot.lane.b32.xlu0 %v932_v44, %s2109_s5 }
 0xe29   :  { %v934_v45 = vpop.permute.xlu0 %933 }
 0xe2a   :  { %1693 = vmatmul.mubr.msk.f32.vlgmr.msra.gmra.mrb[6].mxu0 %vm102_vm1, %v934_v45 }
 0xe2b   :  { %1780 = vmatpush3.bf16.msra.mxu0 %v2246_v9  ;;  %1714 = vmatprep.mubr.msk.f32.mxu0 %vm2106_vm0, %v2107_v1 }
 0xe2c   :  { %1781 = vmatprep.subr.bf16.mxu0 %v2105_v0 }
 0xe2f   :  { %1783 = vmatpush3.bf16.msra.mxu0 %v2253_v15 }
 0xefd   :  { %v1003_v46 = vpop.f32.mrb[6].mxu0 }
 0xefe   :  { %v1008_v47 = vrot.slane %v1003_v46, 3  ;;  %v1009_v48 = vrot.slane %v1003_v46, 4  ;;  %v1694_v49 = vpop.f32.mrb[7].mxu0 }
 0xf00   :  { %v1012_v50 = vadd.f32 %v1008_v47, %v2283_v26  ;;  %v1013_v51 = vadd.f32 %v1009_v48, %v2281_v23 }
 0xf02   :  { %1887 = vtanh.f32 %v1012_v50  ;;  %v1555_v1 = vmul.f32 -1.442695, %v1012_v50  ;;  %v1556_v0 = vmul.f32 -1.442695, %v1013_v51 }
 0xf03   :  { %1889 = vtanh.f32 %v1013_v51 }
 0xf04   :  { %1891 = vpow2.f32 %v1555_v1 }
 0xf05   :  { %1893 = vpow2.f32 %v1556_v0 }
 0xf0c   :  { %v1888_v52 = vpop.eup %1887 }
 0xf0d   :  { %v1890_v53 = vpop.eup %1889  ;;  %1038 = vrot.lane.b32.xlu1 %v1888_v52, %s2108_s23 }
 0xf0e   :  { %1040 = vrot.lane.b32.xlu0 %v1890_v53, %s2108_s23  ;;  %v1892_v9 = vpop.eup %1891 }
 0xf0f   :  { %v1894_v15 = vpop.eup %1893  ;;  %v1020_v58 = vadd.f32 1.0, %v1892_v9 }
 0xf10   :  { %v1021_v59 = vadd.f32 1.0, %v1894_v15 }
 0xf11   :  { %1895 = vrcp.f32 %v1020_v58 }
 0xf12   :  { %1897 = vrcp.f32 %v1021_v59 }
 0xf1b   :  { %v1896_v60 = vpop.eup %1895 }
 0xf1c   :  { %v1898_v62 = vpop.eup %1897  ;;  %v1034_v6 = vmul.f32 %v1896_v60, %v1030_v4 }
 0xf1d   :  { %v1035_v7 = vmul.f32 %v1898_v62, %v1031_v5 }
 0xf7f   :  { %v1039_v61 = vpop.permute.xlu1 %1038 }
 0xf80   :  { %v1041_v63 = vpop.permute.xlu0 %1040  ;;  %v1044_v2 = vmul.f32 %v1896_v60, %v1039_v61 }
 0xf81   :  { %v1045_v3 = vmul.f32 %v1898_v62, %v1041_v63 }
 0xf82   :  { %1048 = vrot.lane.b32.xlu1 %v1044_v2, %s2108_s23 }
 0xf83   :  { %1050 = vrot.lane.b32.xlu0 %v1045_v3, %s2108_s23 }
 0xff4   :  { %v1049_v8 = vpop.permute.xlu1 %1048 }
 0xff5   :  { %v1051_v10 = vpop.permute.xlu0 %1050  ;;  %v1054_v13 = vadd.f32 %v1049_v8, %v1034_v6 }
 0xff6   :  { %v1055_v14 = vadd.f32 %v1051_v10, %v1035_v7 }
 0xff7   :  { %1899 = vtanh.f32 %v1054_v13  ;;  %v1179_v52 = vrot.slane %v1054_v13, 7 }
 0xff8   :  { %1901 = vtanh.f32 %v1055_v14  ;;  %v1180_v53 = vrot.slane %v1055_v14, 7 }
0x1001   :  { %v1900_v16 = vpop.eup %1899 }
0x1002   :  { %v1902_v17 = vpop.eup %1901  ;;  %1060 = vrot.lane.b32.xlu1 %v1900_v16, %s2108_s23 }
0x1003   :  { %1062 = vrot.lane.b32.xlu0 %v1902_v17, %s2108_s23 }
0x1074   :  { %v1061_v18 = vpop.permute.xlu1 %1060 }
0x1075   :  { %v1063_v19 = vpop.permute.xlu0 %1062  ;;  %v2406_v20 = vmul.f32 %v1896_v60, %v1061_v18 }
0x1076   :  { %v2408_v21 = vmul.f32 %v1898_v62, %v1063_v19 }
0x1077   :  { %v1079_v22 = vrot.slane %v2406_v20, 5 }
0x1078   :  { %v1080_v24 = vrot.slane %v2408_v21, 4 }
0x107a   :  { %v1081_v25 = vsel %vm337_vm2, %v1080_v24, %v1079_v22 }
0x107b   :  { %1082 = vrot.lane.b32.xlu1 %v1081_v25, %s2109_s5 }
0x10ed   :  { %v1083_v27 = vpop.permute.xlu1 %1082 }
0x10ee   :  { %1704 = vmatmul.mubr.msk.f32.vlgmr.msra.gmra.mrb[6].mxu1 %vm102_vm1, %v1083_v27 }
0x11c1   :  { %v1152_v28 = vpop.f32.mrb[6].mxu1 }
0x11c2   :  { %v1157_v29 = vrot.slane %v1152_v28, 2  ;;  %v1158_v30 = vrot.slane %v1152_v28, 3  ;;  %v1705_v31 = vpop.f32.mrb[7].mxu1 }
0x11c4   :  { %v1161_v32 = vadd.f32 %v1157_v29, %v2283_v26  ;;  %v1162_v35 = vadd.f32 %v1158_v30, %v2281_v23 }
0x11c6   :  { %1903 = vtanh.f32 %v1161_v32  ;;  %v1558_v38 = vmul.f32 -1.442695, %v1161_v32  ;;  %v1559_v39 = vmul.f32 -1.442695, %v1162_v35 }
0x11c7   :  { %1905 = vtanh.f32 %v1162_v35 }
0x11c8   :  { %1907 = vpow2.f32 %v1558_v38 }
0x11c9   :  { %1909 = vpow2.f32 %v1559_v39 }
0x11d0   :  { %v1904_v36 = vpop.eup %1903 }
0x11d1   :  { %v1906_v37 = vpop.eup %1905  ;;  %1187 = vrot.lane.b32.xlu0 %v1904_v36, %s2108_s23 }
0x11d2   :  { %1189 = vrot.lane.b32.xlu1 %v1906_v37, %s2108_s23  ;;  %v1908_v42 = vpop.eup %1907 }
0x11d3   :  { %v1910_v43 = vpop.eup %1909  ;;  %v1169_v44 = vadd.f32 1.0, %v1908_v42 }
0x11d4   :  { %v1170_v45 = vadd.f32 1.0, %v1910_v43 }
0x11d5   :  { %1911 = vrcp.f32 %v1169_v44 }
0x11d6   :  { %1913 = vrcp.f32 %v1170_v45 }
0x11df   :  { %v1912_v46 = vpop.eup %1911 }
0x11e0   :  { %v1914_v48 = vpop.eup %1913  ;;  %v1183_v1 = vmul.f32 %v1912_v46, %v1179_v52 }
0x11e1   :  { %v1184_v0 = vmul.f32 %v1914_v48, %v1180_v53 }
0x1243   :  { %v1188_v47 = vpop.permute.xlu0 %1187 }
0x1244   :  { %v1190_v49 = vpop.permute.xlu1 %1189  ;;  %v1193_v50 = vmul.f32 %v1912_v46, %v1188_v47 }
0x1245   :  { %v1194_v51 = vmul.f32 %v1914_v48, %v1190_v49 }
0x1246   :  { %1197 = vrot.lane.b32.xlu0 %v1193_v50, %s2108_s23 }
0x1247   :  { %1199 = vrot.lane.b32.xlu1 %v1194_v51, %s2108_s23 }
0x12b8   :  { %v1198_v9 = vpop.permute.xlu0 %1197 }
0x12b9   :  { %v1200_v15 = vpop.permute.xlu1 %1199  ;;  %v1203_v58 = vadd.f32 %v1198_v9, %v1183_v1 }
0x12ba   :  { %v1204_v59 = vadd.f32 %v1200_v15, %v1184_v0 }
0x12bb   :  { %1915 = vtanh.f32 %v1203_v58  ;;  %v1328_v36 = vrot.slane %v1203_v58, 7 }
0x12bc   :  { %1917 = vtanh.f32 %v1204_v59  ;;  %v1329_v37 = vrot.slane %v1204_v59, 7 }
0x12c5   :  { %v1916_v60 = vpop.eup %1915 }
0x12c6   :  { %v1918_v61 = vpop.eup %1917  ;;  %1209 = vrot.lane.b32.xlu0 %v1916_v60, %s2108_s23 }
0x12c7   :  { %1211 = vrot.lane.b32.xlu1 %v1918_v61, %s2108_s23 }
0x1338   :  { %v1210_v62 = vpop.permute.xlu0 %1209 }
0x1339   :  { %v1212_v63 = vpop.permute.xlu1 %1211  ;;  %v1215_v2 = vmul.f32 %v1912_v46, %v1210_v62 }
0x133a   :  { %v2423_v3 = vmul.f32 %v1914_v48, %v1212_v63 }
0x133b   :  { %v1228_v4 = vrot.slane %v1215_v2, 6 }
0x133c   :  { %v1229_v5 = vrot.slane %v2423_v3, 5 }
0x133e   :  { %v1230_v6 = vsel %vm337_vm2, %v1229_v5, %v1228_v4 }
0x133f   :  { %1231 = vrot.lane.b32.xlu0 %v1230_v6, %s2109_s5 }
0x13b1   :  { %v1232_v7 = vpop.permute.xlu0 %1231 }
0x13b2   :  { %1715 = vmatmul.mubr.msk.f32.vlgmr.msra.gmra.mrb[8].mxu0 %vm102_vm1, %v1232_v7 }
0x1485   :  { %v1301_v8 = vpop.f32.mrb[8].mxu0 }
0x1486   :  { %v1306_v10 = vrot.slane %v1301_v8, 1  ;;  %v1307_v13 = vrot.slane %v1301_v8, 2  ;;  %v1716_v14 = vpop.f32.mrb[9].mxu0 }
0x1488   :  { %v1310_v16 = vadd.f32 %v1306_v10, %v2283_v26  ;;  %v1311_v17 = vadd.f32 %v1307_v13, %v2281_v23 }
0x148a   :  { %1919 = vtanh.f32 %v1310_v16  ;;  %v1561_v22 = vmul.f32 -1.442695, %v1310_v16  ;;  %v1562_v24 = vmul.f32 -1.442695, %v1311_v17 }
0x148b   :  { %1921 = vtanh.f32 %v1311_v17 }
0x148c   :  { %1923 = vpow2.f32 %v1561_v22 }
0x148d   :  { %1925 = vpow2.f32 %v1562_v24 }
0x1494   :  { %v1920_v18 = vpop.eup %1919 }
0x1495   :  { %v1922_v19 = vpop.eup %1921  ;;  %1336 = vrot.lane.b32.xlu1 %v1920_v18, %s2108_s23 }
0x1496   :  { %1338 = vrot.lane.b32.xlu0 %v1922_v19, %s2108_s23  ;;  %v1924_v25 = vpop.eup %1923 }
0x1497   :  { %v1926_v27 = vpop.eup %1925  ;;  %v1318_v28 = vadd.f32 1.0, %v1924_v25 }
0x1498   :  { %v1319_v29 = vadd.f32 1.0, %v1926_v27 }
0x1499   :  { %1927 = vrcp.f32 %v1318_v28 }
0x149a   :  { %1929 = vrcp.f32 %v1319_v29 }
0x14a3   :  { %v1928_v26 = vpop.eup %1927 }
0x14a4   :  { %v1930_v30 = vpop.eup %1929  ;;  %v1332_v38 = vmul.f32 %v1928_v26, %v1328_v36 }
0x14a5   :  { %v1333_v39 = vmul.f32 %v1930_v30, %v1329_v37 }
0x1507   :  { %v1337_v23 = vpop.permute.xlu1 %1336 }
0x1508   :  { %v1339_v31 = vpop.permute.xlu0 %1338  ;;  %v1342_v32 = vmul.f32 %v1928_v26, %v1337_v23 }
0x1509   :  { %v1343_v35 = vmul.f32 %v1930_v30, %v1339_v31 }
0x150a   :  { %1346 = vrot.lane.b32.xlu1 %v1342_v32, %s2108_s23 }
0x150b   :  { %1348 = vrot.lane.b32.xlu0 %v1343_v35, %s2108_s23 }
0x157c   :  { %v1347_v42 = vpop.permute.xlu1 %1346 }
0x157d   :  { %v1349_v43 = vpop.permute.xlu0 %1348  ;;  %v1352_v44 = vadd.f32 %v1347_v42, %v1332_v38 }
0x157e   :  { %v1353_v45 = vadd.f32 %v1349_v43, %v1333_v39 }
0x157f   :  { %1931 = vtanh.f32 %v1352_v44 }
0x1580   :  { %1933 = vtanh.f32 %v1353_v45  ;;  %v1385_v49 = vrot.slane %v1353_v45, 7 }
0x1589   :  { %v1932_v46 = vpop.eup %1931 }
0x158a   :  { %v1934_v47 = vpop.eup %1933  ;;  %1358 = vrot.lane.b32.xlu1 %v1932_v46, %s2108_s23 }
0x158b   :  { %1360 = vrot.lane.b32.xlu0 %v1934_v47, %s2108_s23 }
0x158e   :  { %327 = vrot.lane.b32.xlu1 %v2296_v57, %s2109_s5  ;;  %v1396_v57 = vld [vmem:[#allocation9] sm:$0xff] }
0x158f   :  { %475 = vrot.lane.b32.xlu0 %v2316_v33, %s2109_s5  ;;  %v1397_v33 = vld [vmem:[#allocation9 + $0x8] sm:$0xff] }
0x1592   :  { %623 = vrot.lane.b32.xlu1 %v2339_v11, %s2109_s5  ;;  %v1399_v11 = vld [vmem:[#allocation9 + $0x18] sm:$0xff] }
0x1593   :  { %772 = vrot.lane.b32.xlu0 %v2362_v55, %s2109_s5 }
0x1596   :  { %921 = vrot.lane.b32.xlu1 %v2384_v40, %s2109_s5 }
0x1597   :  { %1070 = vrot.lane.b32.xlu0 %v2406_v20, %s2109_s5 }
0x159a   :  { %1219 = vrot.lane.b32.xlu1 %v1215_v2, %s2109_s5 }
0x159b   :  { %477 = vrot.lane.b32.xlu0 %v2318_v34, %s2109_s5  ;;  %v1784_v34 = vpack.c.bf16 %v1397_v33, %v1396_v57 }
0x159d   :  { %1785 = vmatprep.subr.bf16.mxu1 %v1784_v34 }
0x159e   :  { %329 = vrot.lane.b32.xlu1 %v2293_v54, %s2109_s5  ;;  %1787 = vmatpush3.bf16.msra.mxu1 %v1784_v34  ;;  %v1398_v54 = vld [vmem:[#allocation9 + $0x10] sm:$0xff] }
0x159f   :  { %774 = vrot.lane.b32.xlu0 %v2364_v56, %s2109_s5  ;;  %v1788_v55 = vpack.c.bf16 %v1399_v11, %v1398_v54 }
0x15a1   :  { %1789 = vmatprep.subr.bf16.mxu1 %v1788_v55 }
0x15a2   :  { %625 = vrot.lane.b32.xlu1 %v2341_v12, %s2109_s5  ;;  %1791 = vmatpush3.bf16.msra.mxu1 %v1788_v55 }
0x15a3   :  { %1072 = vrot.lane.b32.xlu0 %v2408_v21, %s2109_s5 }
0x15a6   :  { %923 = vrot.lane.b32.xlu1 %v2386_v41, %s2109_s5 }
0x15aa   :  { %1221 = vrot.lane.b32.xlu1 %v2423_v3, %s2109_s5 }
0x15fc   :  { %v1359_v56 = vpop.permute.xlu1 %1358 }
0x15fd   :  { %v1361_v12 = vpop.permute.xlu0 %1360  ;;  %v1364_v40 = vmul.f32 %v1928_v26, %v1359_v56 }
0x15fe   :  { %v1365_v20 = vmul.f32 %v1930_v30, %v1361_v12 }
0x15ff   :  { %1368 = vrot.lane.b32.xlu0 %v1364_v40, %s2109_s5 }
0x1600   :  { %v1377_v41 = vrot.slane %v1365_v20, 7  ;;  %v328_v21 = vpop.permute.xlu1 %327 }
0x1601   :  { %v476_v48 = vpop.permute.xlu0 %475  ;;  %334 = vst.msk [vmem:[#allocation2] sm:$0x1] %vm333_vm3, %v328_v21 }
0x1602   :  { %482 = vst.msk [vmem:[#allocation2] sm:$0x2] %vm481_vm4, %v476_v48  ;;  %1378 = vrot.lane.b32.xlu1 %v1377_v41, %s2109_s5 }
0x1603   :  { %1370 = vrot.lane.b32.xlu0 %v1365_v20, %s2109_s5 }
0x1604   :  { %v624_v50 = vpop.permute.xlu1 %623 }
0x1605   :  { %v773_v51 = vpop.permute.xlu0 %772  ;;  %630 = vst.msk [vmem:[#allocation2] sm:$0x4] %vm629_vm5, %v624_v50 }
0x1606   :  { %779 = vst.msk [vmem:[#allocation2] sm:$0x8] %vm778_vm6, %v773_v51  ;;  %1388 = vrot.lane.b32.xlu1 %v1385_v49, %s2110_s28 }
0x1607   :  { %1386 = vrot.lane.b32.xlu0 %v1352_v44, %s2110_s28 }
0x1608   :  { %v922_v52 = vpop.permute.xlu1 %921 }
0x1609   :  { %v1071_v53 = vpop.permute.xlu0 %1070  ;;  %928 = vst.msk [vmem:[#allocation2] sm:$0x10] %vm927_vm7, %v922_v52 }
0x160a   :  { %1077 = vst.msk [vmem:[#allocation2] sm:$0x20] %vm1076_vm8, %v1071_v53 }
0x160c   :  { %v1220_v1 = vpop.permute.xlu1 %1219 }
0x160d   :  { %v478_v0 = vpop.permute.xlu0 %477  ;;  %1226 = vst.msk [vmem:[#allocation2] sm:$0x40] %vm1225_vm9, %v1220_v1 }
0x160e   :  { %483 = vst.msk [vmem:[#allocation2 + $0x8] sm:$0x2] %vm481_vm4, %v478_v0 }
0x1610   :  { %v330_v9 = vpop.permute.xlu1 %329 }
0x1611   :  { %v775_v15 = vpop.permute.xlu0 %774  ;;  %335 = vst.msk [vmem:[#allocation2 + $0x8] sm:$0x1] %vm333_vm3, %v330_v9 }
0x1612   :  { %780 = vst.msk [vmem:[#allocation2 + $0x8] sm:$0x8] %vm778_vm6, %v775_v15 }
0x1614   :  { %v626_v58 = vpop.permute.xlu1 %625 }
0x1615   :  { %v1073_v59 = vpop.permute.xlu0 %1072  ;;  %631 = vst.msk [vmem:[#allocation2 + $0x8] sm:$0x4] %vm629_vm5, %v626_v58 }
0x1616   :  { %1078 = vst.msk [vmem:[#allocation2 + $0x8] sm:$0x20] %vm1076_vm8, %v1073_v59 }
0x1618   :  { %v924_v60 = vpop.permute.xlu1 %923 }
0x1619   :  { %929 = vst.msk [vmem:[#allocation2 + $0x8] sm:$0x10] %vm927_vm7, %v924_v60 }
0x161c   :  { %v1222_v61 = vpop.permute.xlu1 %1221 }
0x161d   :  { %1227 = vst.msk [vmem:[#allocation2 + $0x8] sm:$0x40] %vm1225_vm9, %v1222_v61 }
0x1671   :  { %v1369_v62 = vpop.permute.xlu0 %1368 }
0x1672   :  { %1375 = vst.msk [vmem:[#allocation2] sm:$0x80] %vm1374_vm10, %v1369_v62  ;;  %1381 = vst.msk [vmem:[#allocation12 - $0x7] sm:$0x80] %vm1374_vm10, %v1369_v62 }
0x1674   :  { %v1379_v63 = vpop.permute.xlu1 %1378 }
0x1675   :  { %1382 = vst.msk [vmem:[#allocation12 + $0x1] sm:$0x1] %vm333_vm3, %v1379_v63  ;;  %v1371_v2 = vpop.permute.xlu0 %1370 }
0x1676   :  { %1376 = vst.msk [vmem:[#allocation2 + $0x8] sm:$0x80] %vm1374_vm10, %v1371_v2 }
0x1678   :  { %v1389_v3 = vpop.permute.xlu1 %1388 }
0x1679   :  { %1393 = vst.msk [vmem:[#allocation14 + $0x1] sm:$0x1] %vm333_vm3, %v1389_v3  ;;  %v1387_v4 = vpop.permute.xlu0 %1386  ;;  %v1394_v5 = vld [vmem:[#allocation2] sm:$0xff] }
0x167a   :  { %1392 = vst.msk [vmem:[#allocation14 - $0x7] sm:$0x80] %vm1374_vm10, %v1387_v4  ;;  %1725 = vmatprep.mubr.msk.f32.mxu1 %vm102_vm1, %v1394_v5 }
0x167d   :  { %v1395_v6 = vld [vmem:[#allocation2 + $0x8] sm:$0xff] }
0x167e   :  { %1726 = vmatmul.mubr.msk.f32.vlgmr.msra.gmra.mrb[8].mxu1 %vm102_vm1, %v1395_v6 }
0x167f   :  { %2034 = shalt.err (!%p2031_p8)
}
0x1680   :  { %s2035_s12 = scalar_lea.hbm %s2536_s9, 32 }
0x1681   :  { %p2036_p9 = scmp.ne.s32.totalorder %s2536_s9, %s2035_s12  ;;  %p2039_p10 = scmp.lt.u32.totalorder %s2035_s12, %s2536_s9 }
0x1683   :  { %p2041_p11 = pnand %p2039_p10, %p2036_p9 }
0x1685   :  { %2044 = shalt.err (!%p2041_p11)
}
0x1686   :  { %1511 = dma.vmem_to_hbm [thread:$0]  %s1509_s30, 32, %s2536_s9, [#allocation13]  }
0x1687   :  { %s2112_s19 = smov [#allocation14]  }
0x1688   :  { %s1518_s21 = sshll.u32 %s2112_s19, 4  ;;  %s1519_s21 = int_to_ptr.vmem [resolvable:$true] %s1518_s21 }
0x1689   :  { %s2045_s4 = scalar_lea.vmem %s1519_s21, 32  ;;  %p2050_p13 = scmp.lt.s32.totalorder %s1519_s21, %s1519_s21 }
0x168a   :  { %p2046_p12 = scmp.ne.s32.totalorder %s1519_s21, %s2045_s4  ;;  %p2051_p0 = scmp.lt.s32.totalorder %s2045_s4, %s2045_s4 }
0x168c   :  { %p2052_p1 = por %p2051_p0, %p2050_p13 }
0x168e   :  { %p2053_p2 = pnand %p2052_p1, %p2046_p12 }
0x1690   :  { %2056 = shalt.err (!%p2053_p2)
}
0x1691   :  { %s2057_s22 = scalar_lea.hbm %s2537_s10, 32 }
0x1692   :  { %p2058_p3 = scmp.ne.s32.totalorder %s2537_s10, %s2057_s22  ;;  %p2061_p4 = scmp.lt.u32.totalorder %s2057_s22, %s2537_s10 }
0x1694   :  { %p2063_p5 = pnand %p2061_p4, %p2058_p3 }
0x1696   :  { %2066 = shalt.err (!%p2063_p5)
}
0x1697   :  { %1521 = dma.vmem_to_hbm [thread:$0]  %s1519_s21, 32, %s2537_s10, [#allocation13]   ;;  %v1563_v7 = vld [vmem:[%s2534_s7] ss:$0 sm:$0xff] }
0x1698   :  { %s2113_s29 = smov [#allocation11]  }
0x1699   :  { %s1495_s30 = sshll.u32 %s2113_s29, 4  ;;  %s1496_s30 = int_to_ptr.vmem [resolvable:$true] %s1495_s30 }
0x169a   :  { %s2067_s11 = scalar_lea.vmem %s1496_s30, 256  ;;  %p2072_p7 = scmp.lt.s32.totalorder %s1496_s30, %s1496_s30 }
0x169b   :  { %p2068_p6 = scmp.ne.s32.totalorder %s1496_s30, %s2067_s11  ;;  %p2073_p8 = scmp.lt.s32.totalorder %s2067_s11, %s2067_s11 }
0x169d   :  { %p2074_p9 = por %p2073_p8, %p2072_p7 }
0x169f   :  { %p2075_p10 = pnand %p2074_p9, %p2068_p6 }
0x1751   :  { %v1727_v8 = vpop.f32.mrb[8].mxu1 }
0x1752   :  { %v1485_v10 = vadd.f32 %v1727_v8, %v1563_v7  ;;  %v1479_v13 = vpop.f32.mrb[9].mxu1 }
0x1753   :  { %v1480_v14 = vadd.f32 %v1563_v7, %v1479_v13 }
0x1754   :  { %1489 = vst [vmem:[#allocation11 + $0x8] sm:$0xff] %v1485_v10 }
0x1755   :  { %1488 = vst [vmem:[#allocation11] sm:$0xff] %v1480_v14 }
0x1756   :  { %2078 = shalt.err (!%p2075_p10)
}
0x1757   :  { %s2079_s7 = scalar_lea.hbm %s2535_s8, 256 }
0x1758   :  { %p2080_p11 = scmp.ne.s32.totalorder %s2535_s8, %s2079_s7  ;;  %p2083_p12 = scmp.lt.u32.totalorder %s2079_s7, %s2535_s8 }
0x175a   :  { %p2085_p13 = pnand %p2083_p12, %p2080_p11 }
0x175c   :  { %2088 = shalt.err (!%p2085_p13)
}
0x175d   :  { %1501 = dma.vmem_to_hbm [thread:$0]  %s1496_s30, 256, %s2535_s8, [#allocation5], %s2101_s25, %s2101_s25, %s2102_s26  }
0x175e   :  { %2095 = dma.done.wait [#allocation5], 256  }
0x175f   :  { %2096 = vsyncadd [#allocation5], 4294967040 }
0x1760   :  { %2097 = dma.done.wait [#allocation13], 64  }
0x1761   :  { %2098 = vsyncadd [#allocation13], 4294967232 }
0x1762   :  { %1531 = vsyncpa [#allocation4], 1 }
0x1763   :  { %1532 = vsyncpa [#allocation7], 1 }
0x1764   :  { %1533 = vsyncpa [#allocation10], 1 }
0x1765   :  { %1534 = vsyncpa [#allocation5], 1 }
0x1766   :  { %1535 = vsyncpa [#allocation13], 1 }

</bundles_post_ra>
